<compile_context>
chip_gen: v7x
topology: tpu7x:2x2x1
jax: 0.10.0
libtpu: 0.0.40
codegen_flags: <defaults>
</compile_context>

<pallas_src>
import functools
import math

import numpy as np

import jax
import jax.numpy as jnp
from jax.experimental import pallas as pl
from jax.experimental.pallas import tpu as pltpu


def _round_up(x, m):
    return (x + m - 1) // m * m


# ------------------------------ Pallas kernel ------------------------------ #
def _gemm_bias_act_kernel(lhs_ref, rhs_ref, bias_ref, o_ref, *, alpha):
    """o[g] = leaky(lhs[g] @ rhs[g] + bias); operands bf16, epilogue f32."""
    acc = jnp.dot(lhs_ref[0], rhs_ref[0], preferred_element_type=jnp.float32)
    acc = acc + bias_ref[...]                       # broadcast over rows/lanes
    if alpha is not None:                           # LeakyReLU in f32
        acc = jnp.where(acc >= 0.0, acc, alpha * acc)
    o_ref[0] = acc.astype(o_ref.dtype)


def fused_gemm(lhs_g, rhs_g, bias2d, *, alpha, out_dtype):
    """Grouped GEMM + bias + optional LeakyReLU.

    lhs_g : (G, R, K) bf16   rhs_g : (G, K, M) bf16   bias2d : f32, broadcastable
    Returns (G, R, M) in `out_dtype`.  Grid iterates (in parallel) over G.
    """
    G, R, K = lhs_g.shape
    G2, K2, M = rhs_g.shape
    assert G == G2 and K == K2
    kernel = functools.partial(_gemm_bias_act_kernel, alpha=alpha)
    return pl.pallas_call(
        kernel,
        out_shape=jax.ShapeDtypeStruct((G, R, M), out_dtype),
        grid_spec=pltpu.PrefetchScalarGridSpec(
            num_scalar_prefetch=0,
            grid=(G,),
            in_specs=[
                pl.BlockSpec((1, R, K), lambda g: (g, 0, 0)),
                pl.BlockSpec((1, K, M), lambda g: (g, 0, 0)),
                pl.BlockSpec(bias2d.shape, lambda g: (0, 0)),
            ],
            out_specs=pl.BlockSpec((1, R, M), lambda g: (g, 0, 0)),
        ),
        compiler_params=pltpu.CompilerParams(
            dimension_semantics=("parallel",)),
    )(lhs_g, rhs_g, bias2d)


# ------------------------------ parameters --------------------------------- #
def make_conv_decoder_params(key, input_nc=3, img_sz=64):
    """Raw (PyTorch-layout) synthetic parameters: [(W, b, stride, pad, alpha)]."""
    n = int(math.log2(img_sz)) - 1                  # get_num_layers(img_sz) - 1
    cfg = [(64, 32, 4, 1, 0, None)]                 # 'head' (no activation)
    for i in range(n - 3):                          # 'pyramid-i'
        fin = 32 // 2 ** i
        cfg.append((fin, fin // 2, 4, 2, 1, 0.2))
    cfg.append((8, input_nc, 4, 2, 1, 0.2))         # 'input'

    params = []
    for (cin, cout, k, s, p, alpha) in cfg:
        key, wk, bk = jax.random.split(key, 3)
        bound = 1.0 / math.sqrt(cout * k * k)
        w = jax.random.uniform(wk, (cin, cout, k, k), jnp.float32, -bound, bound)
        b = jax.random.uniform(bk, (cout,), jnp.float32, -bound, bound)
        params.append((w, b, s, p, alpha))
    return params


def pack_decoder_params(raw):
    """Pre-pack / pre-pad weights once (channel-major, bf16, phase-decomposed)."""
    w_h, b_h, s_h, p_h, a_h = raw[0]
    assert s_h == 1 and p_h == 0
    cin_h, cout_h, k_h, _ = w_h.shape
    head = dict(
        rhs=jnp.asarray(w_h.reshape(cin_h, cout_h * k_h * k_h),
                        dtype=jnp.bfloat16)[None],              # (1, Cin, Cout*k*k)
        bias=jnp.repeat(b_h, k_h * k_h)[None, :].astype(jnp.float32),  # (1, Cout*k*k)
        cout=int(cout_h), k=int(k_h), alpha=a_h,
    )

    deconv = []
    for (w, b, s, p, alpha) in raw[1:]:
        assert s == 2 and p == 1 and w.shape[2] == 4
        cin, cout, _, _ = w.shape
        cpad = _round_up(cout, 8)
        wnp = np.asarray(w)
        wph = np.zeros((4, cpad, 4 * cin), np.float32)
        for py in (0, 1):
            for px in (0, 1):
                ph = py * 2 + px
                for ry in (0, 1):
                    for rx in (0, 1):
                        tap = ry * 2 + rx
                        ky = (3 - py) - 2 * ry
                        kx = (3 - px) - 2 * rx
                        # Wph[ph, co, tap*Cin + ci] = W[ci, co, ky, kx]
                        wph[ph, :cout, tap * cin:(tap + 1) * cin] = wnp[:, :, ky, kx].T
        bias = np.zeros((cpad, 1), np.float32)
        bias[:cout, 0] = np.asarray(b)
        deconv.append(dict(
            w=jnp.asarray(wph, dtype=jnp.bfloat16),              # (4, Cout_pad, 4*Cin)
            bias=jnp.asarray(bias),                              # (Cout_pad, 1)
            cout=int(cout), alpha=float(alpha),
        ))
    return dict(head=head, deconv=deconv)


# ------------------------------ forward pass -------------------------------- #
def conv_decoder_forward(packed, x_nchw, use_skips=False, skips_stride=2):
    """ConvDecoder forward. Internal layout is channel-major (C, N, H, W)."""
    N = x_nchw.shape[0]

    # ---- 'head': ConvTranspose2d(64,32,4) on a 1x1 latent == dense matmul ----
    head = packed['head']
    cout_h, k_h = head['cout'], head['k']
    x2 = x_nchw.reshape(N, -1).astype(jnp.bfloat16)
    rows = _round_up(N, 8)
    x2p = jnp.zeros((rows, x2.shape[1]), jnp.bfloat16).at[:N].set(x2)
    o = fused_gemm(x2p[None], head['rhs'], head['bias'],
                   alpha=head['alpha'], out_dtype=jnp.bfloat16)   # (1, rows, Cout*k*k)
    y = o[0, :N].reshape(N, cout_h, k_h, k_h).transpose(1, 0, 2, 3)  # (C, N, 4, 4)

    outs = [y]
    # ---- stride-2 ConvTranspose blocks (sub-pixel phase decomposition) ----
    n_dec = len(packed['deconv'])
    for li, layer in enumerate(packed['deconv']):
        cin, nb, H, W = y.shape
        xp = jnp.pad(y, ((0, 0), (0, 0), (1, 1), (1, 1)))          # (Cin, N, H+2, W+2)

        slabs = []
        for py in (0, 1):
            for px in (0, 1):
                taps = [xp[:, :, py + ry: py + ry + H, px + rx: px + rx + W]
                        for ry in (0, 1) for rx in (0, 1)]
                slabs.append(jnp.stack(taps, 0).reshape(4 * cin, nb * H * W))
        a_all = jnp.stack(slabs, 0)                                # (4, 4*Cin, M) bf16

        last = li == n_dec - 1
        o = fused_gemm(layer['w'], a_all, layer['bias'],
                       alpha=layer['alpha'],
                       out_dtype=jnp.float32 if last else jnp.bfloat16)  # (4,Cpad,M)

        cout = layer['cout']
        o = o.reshape(2, 2, -1, nb, H, W)[:, :, :cout]             # (py,px,C,N,H,W)
        y = jnp.transpose(o, (2, 3, 4, 0, 5, 1)).reshape(cout, nb, 2 * H, 2 * W)
        outs.append(y)

    final = jnp.transpose(y, (1, 0, 2, 3)).astype(jnp.float32)     # NCHW at boundary
    if use_skips:
        skips = []
        for i, a in enumerate(outs):
            if i % skips_stride == 0:
                skips.append(jnp.transpose(a, (1, 0, 2, 3)).astype(jnp.float32))
            else:
                skips.append(None)
        return final, skips[:-1]
    return final


# -------------------------- plain-JAX reference ----------------------------- #
def reference_forward(raw_params, x):
    y = x
    for (w, b, s, p, alpha) in raw_params:
        k = w.shape[2]
        wconv = jnp.transpose(w[:, :, ::-1, ::-1], (1, 0, 2, 3))   # (Cout,Cin,KH,KW)
        y = jax.lax.conv_general_dilated(
            y, wconv, window_strides=(1, 1),
            padding=[(k - 1 - p, k - 1 - p)] * 2,
            lhs_dilation=(s, s),
            dimension_numbers=('NCHW', 'OIHW', 'NCHW'))
        y = y + b[None, :, None, None]
        if alpha is not None:
            y = jnp.where(y >= 0, y, alpha * y)
    return y


# ---------------------------------- main ------------------------------------ #
if __name__ == "__main__":
    key = jax.random.PRNGKey(0)
    kp, kx = jax.random.split(key)

    raw_params = make_conv_decoder_params(kp, input_nc=3, img_sz=64)
    packed = pack_decoder_params(raw_params)

    # latent input to the decoder: (batch, 64, 1, 1), NCHW
    x = jax.random.normal(kx, (2, 64, 1, 1), jnp.float32)

    fwd = jax.jit(lambda xin: conv_decoder_forward(packed, xin, use_skips=False))
    out = jax.block_until_ready(fwd(x))

    assert out.shape == (2, 3, 32, 32), out.shape
    assert bool(jnp.all(jnp.isfinite(out)))

    # loose check vs. f32 XLA reference (kernel uses bf16 MXU operands)
    ref = reference_forward(raw_params, x)
    rel = float(jnp.max(jnp.abs(out - ref)) / (jnp.max(jnp.abs(ref)) + 1e-6))
    assert rel < 0.1, rel

    print("KERNEL_OK")
</pallas_src>

<mosaic_0001>
module attributes {stable_mosaic.version = 11 : i64} {
  func.func @_gemm_bias_act_kernel(%arg0: i32, %arg1: memref<1x8x64xbf16, #tpu.memory_space<vmem>>, %arg2: memref<1x64x512xbf16, #tpu.memory_space<vmem>>, %arg3: memref<1x512xf32, #tpu.memory_space<vmem>>, %arg4: memref<1x8x512xbf16, #tpu.memory_space<vmem>>) attributes {dimension_semantics = [#tpu.dimension_semantics<parallel>], iteration_bounds = array<i64: 1>, scalar_prefetch = 0 : i64, scratch_operands = 0 : i64, tpu.core_type = #tpu.core_type<tc>, window_params = [{transform_indices = @transform_0, window_bounds = array<i64: 1, 8, 64>}, {transform_indices = @transform_1, window_bounds = array<i64: 1, 64, 512>}, {pipeline_mode = #tpu.pipeline_mode<synchronous>, transform_indices = @transform_2, window_bounds = array<i64: 1, 512>}, {transform_indices = @transform_3, window_bounds = array<i64: 1, 8, 512>}]} {
    %c0 = arith.constant 0 : index
    %c0_0 = arith.constant 0 : index
    %c0_1 = arith.constant 0 : index
    %0 = vector.load %arg1[%c0, %c0_0, %c0_1] : memref<1x8x64xbf16, #tpu.memory_space<vmem>>, vector<1x8x64xbf16>
    %1 = vector.shape_cast %0 : vector<1x8x64xbf16> to vector<8x64xbf16>
    %c0_2 = arith.constant 0 : index
    %c0_3 = arith.constant 0 : index
    %c0_4 = arith.constant 0 : index
    %2 = vector.load %arg2[%c0_2, %c0_3, %c0_4] : memref<1x64x512xbf16, #tpu.memory_space<vmem>>, vector<1x64x512xbf16>
    %3 = vector.shape_cast %2 : vector<1x64x512xbf16> to vector<64x512xbf16>
    %cst = arith.constant dense<0.000000e+00> : vector<8x512xf32>
    %4 = tpu.matmul %1, %3, %cst {dimension_numbers = #tpu.dot_dimension_numbers<[1], [0], [0], [1], [0, 0, 1, 1], [], []>} : vector<8x64xbf16>, vector<64x512xbf16>, vector<8x512xf32> -> vector<8x512xf32>
    %c0_5 = arith.constant 0 : index
    %c0_6 = arith.constant 0 : index
    %5 = vector.load %arg3[%c0_5, %c0_6] : memref<1x512xf32, #tpu.memory_space<vmem>>, vector<1x512xf32>
    %6 = vector.broadcast %5 : vector<1x512xf32> to vector<8x512xf32>
    %7 = arith.addf %4, %6 : vector<8x512xf32>
    %8 = arith.truncf %7 : vector<8x512xf32> to vector<8x512xbf16>
    %c0_7 = arith.constant 0 : index
    %c0_8 = arith.constant 0 : index
    %c0_9 = arith.constant 0 : index
    %9 = vector.load %arg4[%c0_7, %c0_8, %c0_9] : memref<1x8x512xbf16, #tpu.memory_space<vmem>>, vector<1x8x512xbf16>
    %10 = vector.shape_cast %9 : vector<1x8x512xbf16> to vector<8x512xbf16>
    %11 = vector.shape_cast %8 : vector<8x512xbf16> to vector<1x8x512xbf16>
    tpu.vector_store %arg4[%c0_7, %c0_8, %c0_9], %11 {strides = array<i32>} : memref<1x8x512xbf16, #tpu.memory_space<vmem>>, vector<1x8x512xbf16>,
    return
  }
  func.func @transform_0(%arg0: i32) -> (i32, i32, i32) {
    %c0_i32 = arith.constant 0 : i32
    %c0_i32_0 = arith.constant 0 : i32
    %c0_i32_1 = arith.constant 0 : i32
    return %arg0, %c0_i32, %c0_i32_0 : i32, i32, i32
  }
  func.func @transform_1(%arg0: i32) -> (i32, i32, i32) {
    %c0_i32 = arith.constant 0 : i32
    %c0_i32_0 = arith.constant 0 : i32
    %c0_i32_1 = arith.constant 0 : i32
    return %arg0, %c0_i32, %c0_i32_0 : i32, i32, i32
  }
  func.func @transform_2(%arg0: i32) -> (i32, i32) {
    %c0_i32 = arith.constant 0 : i32
    %c0_i32_0 = arith.constant 0 : i32
    %c0_i32_1 = arith.constant 0 : i32
    return %c0_i32, %c0_i32_0 : i32, i32
  }
  func.func @transform_3(%arg0: i32) -> (i32, i32, i32) {
    %c0_i32 = arith.constant 0 : i32
    %c0_i32_0 = arith.constant 0 : i32
    %c0_i32_1 = arith.constant 0 : i32
    return %arg0, %c0_i32, %c0_i32_0 : i32, i32, i32
  }
}

module attributes {stable_mosaic.version = 11 : i64} {
  func.func @_gemm_bias_act_kernel(%arg0: i32, %arg1: memref<1x16x128xbf16, #tpu.memory_space<vmem>>, %arg2: memref<1x128x32xbf16, #tpu.memory_space<vmem>>, %arg3: memref<16x1xf32, #tpu.memory_space<vmem>>, %arg4: memref<1x16x32xbf16, #tpu.memory_space<vmem>>) attributes {dimension_semantics = [#tpu.dimension_semantics<parallel>], iteration_bounds = array<i64: 4>, scalar_prefetch = 0 : i64, scratch_operands = 0 : i64, tpu.core_type = #tpu.core_type<tc>, window_params = [{transform_indices = @transform_0, window_bounds = array<i64: 1, 16, 128>}, {transform_indices = @transform_1, window_bounds = array<i64: 1, 128, 32>}, {pipeline_mode = #tpu.pipeline_mode<synchronous>, transform_indices = @transform_2, window_bounds = array<i64: 16, 1>}, {transform_indices = @transform_3, window_bounds = array<i64: 1, 16, 32>}]} {
    %c0 = arith.constant 0 : index
    %c0_0 = arith.constant 0 : index
    %c0_1 = arith.constant 0 : index
    %0 = vector.load %arg1[%c0, %c0_0, %c0_1] : memref<1x16x128xbf16, #tpu.memory_space<vmem>>, vector<1x16x128xbf16>
    %1 = vector.shape_cast %0 : vector<1x16x128xbf16> to vector<16x128xbf16>
    %c0_2 = arith.constant 0 : index
    %c0_3 = arith.constant 0 : index
    %c0_4 = arith.constant 0 : index
    %2 = vector.load %arg2[%c0_2, %c0_3, %c0_4] : memref<1x128x32xbf16, #tpu.memory_space<vmem>>, vector<1x128x32xbf16>
    %3 = vector.shape_cast %2 : vector<1x128x32xbf16> to vector<128x32xbf16>
    %cst = arith.constant dense<0.000000e+00> : vector<16x32xf32>
    %4 = tpu.matmul %1, %3, %cst {dimension_numbers = #tpu.dot_dimension_numbers<[1], [0], [0], [1], [0, 0, 1, 1], [], []>} : vector<16x128xbf16>, vector<128x32xbf16>, vector<16x32xf32> -> vector<16x32xf32>
    %c0_5 = arith.constant 0 : index
    %c0_6 = arith.constant 0 : index
    %5 = vector.load %arg3[%c0_5, %c0_6] : memref<16x1xf32, #tpu.memory_space<vmem>>, vector<16x1xf32>
    %6 = vector.broadcast %5 : vector<16x1xf32> to vector<16x32xf32>
    %7 = arith.addf %4, %6 : vector<16x32xf32>
    %cst_7 = arith.constant 0.000000e+00 : f32
    %8 = vector.broadcast %cst_7 : f32 to vector<16x32xf32>
    %9 = arith.cmpf oge, %7, %8 : vector<16x32xf32>
    %cst_8 = arith.constant 2.000000e-01 : f32
    %10 = vector.broadcast %cst_8 : f32 to vector<16x32xf32>
    %11 = arith.mulf %10, %7 : vector<16x32xf32>
    %12 = arith.select %9, %7, %11 : vector<16x32xi1>, vector<16x32xf32>
    %13 = arith.truncf %12 : vector<16x32xf32> to vector<16x32xbf16>
    %c0_9 = arith.constant 0 : index
    %c0_10 = arith.constant 0 : index
    %c0_11 = arith.constant 0 : index
    %14 = vector.load %arg4[%c0_9, %c0_10, %c0_11] : memref<1x16x32xbf16, #tpu.memory_space<vmem>>, vector<1x16x32xbf16>
    %15 = vector.shape_cast %14 : vector<1x16x32xbf16> to vector<16x32xbf16>
    %16 = vector.shape_cast %13 : vector<16x32xbf16> to vector<1x16x32xbf16>
    tpu.vector_store %arg4[%c0_9, %c0_10, %c0_11], %16 {strides = array<i32>} : memref<1x16x32xbf16, #tpu.memory_space<vmem>>, vector<1x16x32xbf16>,
    return
  }
  func.func @transform_0(%arg0: i32) -> (i32, i32, i32) {
    %c0_i32 = arith.constant 0 : i32
    %c0_i32_0 = arith.constant 0 : i32
    %c0_i32_1 = arith.constant 0 : i32
    return %arg0, %c0_i32, %c0_i32_0 : i32, i32, i32
  }
  func.func @transform_1(%arg0: i32) -> (i32, i32, i32) {
    %c0_i32 = arith.constant 0 : i32
    %c0_i32_0 = arith.constant 0 : i32
    %c0_i32_1 = arith.constant 0 : i32
    return %arg0, %c0_i32, %c0_i32_0 : i32, i32, i32
  }
  func.func @transform_2(%arg0: i32) -> (i32, i32) {
    %c0_i32 = arith.constant 0 : i32
    %c0_i32_0 = arith.constant 0 : i32
    %c0_i32_1 = arith.constant 0 : i32
    return %c0_i32, %c0_i32_0 : i32, i32
  }
  func.func @transform_3(%arg0: i32) -> (i32, i32, i32) {
    %c0_i32 = arith.constant 0 : i32
    %c0_i32_0 = arith.constant 0 : i32
    %c0_i32_1 = arith.constant 0 : i32
    return %arg0, %c0_i32, %c0_i32_0 : i32, i32, i32
  }
}

module attributes {stable_mosaic.version = 11 : i64} {
  func.func @_gemm_bias_act_kernel(%arg0: i32, %arg1: memref<1x8x64xbf16, #tpu.memory_space<vmem>>, %arg2: memref<1x64x128xbf16, #tpu.memory_space<vmem>>, %arg3: memref<8x1xf32, #tpu.memory_space<vmem>>, %arg4: memref<1x8x128xbf16, #tpu.memory_space<vmem>>) attributes {dimension_semantics = [#tpu.dimension_semantics<parallel>], iteration_bounds = array<i64: 4>, scalar_prefetch = 0 : i64, scratch_operands = 0 : i64, tpu.core_type = #tpu.core_type<tc>, window_params = [{transform_indices = @transform_0, window_bounds = array<i64: 1, 8, 64>}, {transform_indices = @transform_1, window_bounds = array<i64: 1, 64, 128>}, {pipeline_mode = #tpu.pipeline_mode<synchronous>, transform_indices = @transform_2, window_bounds = array<i64: 8, 1>}, {transform_indices = @transform_3, window_bounds = array<i64: 1, 8, 128>}]} {
    %c0 = arith.constant 0 : index
    %c0_0 = arith.constant 0 : index
    %c0_1 = arith.constant 0 : index
    %0 = vector.load %arg1[%c0, %c0_0, %c0_1] : memref<1x8x64xbf16, #tpu.memory_space<vmem>>, vector<1x8x64xbf16>
    %1 = vector.shape_cast %0 : vector<1x8x64xbf16> to vector<8x64xbf16>
    %c0_2 = arith.constant 0 : index
    %c0_3 = arith.constant 0 : index
    %c0_4 = arith.constant 0 : index
    %2 = vector.load %arg2[%c0_2, %c0_3, %c0_4] : memref<1x64x128xbf16, #tpu.memory_space<vmem>>, vector<1x64x128xbf16>
    %3 = vector.shape_cast %2 : vector<1x64x128xbf16> to vector<64x128xbf16>
    %cst = arith.constant dense<0.000000e+00> : vector<8x128xf32>
    %4 = tpu.matmul %1, %3, %cst {dimension_numbers = #tpu.dot_dimension_numbers<[1], [0], [0], [1], [0, 0, 1, 1], [], []>} : vector<8x64xbf16>, vector<64x128xbf16>, vector<8x128xf32> -> vector<8x128xf32>
    %c0_5 = arith.constant 0 : index
    %c0_6 = arith.constant 0 : index
    %5 = vector.load %arg3[%c0_5, %c0_6] : memref<8x1xf32, #tpu.memory_space<vmem>>, vector<8x1xf32>
    %6 = vector.broadcast %5 : vector<8x1xf32> to vector<8x128xf32>
    %7 = arith.addf %4, %6 : vector<8x128xf32>
    %cst_7 = arith.constant 0.000000e+00 : f32
    %8 = vector.broadcast %cst_7 : f32 to vector<8x128xf32>
    %9 = arith.cmpf oge, %7, %8 : vector<8x128xf32>
    %cst_8 = arith.constant 2.000000e-01 : f32
    %10 = vector.broadcast %cst_8 : f32 to vector<8x128xf32>
    %11 = arith.mulf %10, %7 : vector<8x128xf32>
    %12 = arith.select %9, %7, %11 : vector<8x128xi1>, vector<8x128xf32>
    %13 = arith.truncf %12 : vector<8x128xf32> to vector<8x128xbf16>
    %c0_9 = arith.constant 0 : index
    %c0_10 = arith.constant 0 : index
    %c0_11 = arith.constant 0 : index
    %14 = vector.load %arg4[%c0_9, %c0_10, %c0_11] : memref<1x8x128xbf16, #tpu.memory_space<vmem>>, vector<1x8x128xbf16>
    %15 = vector.shape_cast %14 : vector<1x8x128xbf16> to vector<8x128xbf16>
    %16 = vector.shape_cast %13 : vector<8x128xbf16> to vector<1x8x128xbf16>
    tpu.vector_store %arg4[%c0_9, %c0_10, %c0_11], %16 {strides = array<i32>} : memref<1x8x128xbf16, #tpu.memory_space<vmem>>, vector<1x8x128xbf16>,
    return
  }
  func.func @transform_0(%arg0: i32) -> (i32, i32, i32) {
    %c0_i32 = arith.constant 0 : i32
    %c0_i32_0 = arith.constant 0 : i32
    %c0_i32_1 = arith.constant 0 : i32
    return %arg0, %c0_i32, %c0_i32_0 : i32, i32, i32
  }
  func.func @transform_1(%arg0: i32) -> (i32, i32, i32) {
    %c0_i32 = arith.constant 0 : i32
    %c0_i32_0 = arith.constant 0 : i32
    %c0_i32_1 = arith.constant 0 : i32
    return %arg0, %c0_i32, %c0_i32_0 : i32, i32, i32
  }
  func.func @transform_2(%arg0: i32) -> (i32, i32) {
    %c0_i32 = arith.constant 0 : i32
    %c0_i32_0 = arith.constant 0 : i32
    %c0_i32_1 = arith.constant 0 : i32
    return %c0_i32, %c0_i32_0 : i32, i32
  }
  func.func @transform_3(%arg0: i32) -> (i32, i32, i32) {
    %c0_i32 = arith.constant 0 : i32
    %c0_i32_0 = arith.constant 0 : i32
    %c0_i32_1 = arith.constant 0 : i32
    return %arg0, %c0_i32, %c0_i32_0 : i32, i32, i32
  }
}

module attributes {stable_mosaic.version = 11 : i64} {
  func.func @_gemm_bias_act_kernel(%arg0: i32, %arg1: memref<1x8x32xbf16, #tpu.memory_space<vmem>>, %arg2: memref<1x32x512xbf16, #tpu.memory_space<vmem>>, %arg3: memref<8x1xf32, #tpu.memory_space<vmem>>, %arg4: memref<1x8x512xf32, #tpu.memory_space<vmem>>) attributes {dimension_semantics = [#tpu.dimension_semantics<parallel>], iteration_bounds = array<i64: 4>, scalar_prefetch = 0 : i64, scratch_operands = 0 : i64, tpu.core_type = #tpu.core_type<tc>, window_params = [{transform_indices = @transform_0, window_bounds = array<i64: 1, 8, 32>}, {transform_indices = @transform_1, window_bounds = array<i64: 1, 32, 512>}, {pipeline_mode = #tpu.pipeline_mode<synchronous>, transform_indices = @transform_2, window_bounds = array<i64: 8, 1>}, {transform_indices = @transform_3, window_bounds = array<i64: 1, 8, 512>}]} {
    %c0 = arith.constant 0 : index
    %c0_0 = arith.constant 0 : index
    %c0_1 = arith.constant 0 : index
    %0 = vector.load %arg1[%c0, %c0_0, %c0_1] : memref<1x8x32xbf16, #tpu.memory_space<vmem>>, vector<1x8x32xbf16>
    %1 = vector.shape_cast %0 : vector<1x8x32xbf16> to vector<8x32xbf16>
    %c0_2 = arith.constant 0 : index
    %c0_3 = arith.constant 0 : index
    %c0_4 = arith.constant 0 : index
    %2 = vector.load %arg2[%c0_2, %c0_3, %c0_4] : memref<1x32x512xbf16, #tpu.memory_space<vmem>>, vector<1x32x512xbf16>
    %3 = vector.shape_cast %2 : vector<1x32x512xbf16> to vector<32x512xbf16>
    %cst = arith.constant dense<0.000000e+00> : vector<8x512xf32>
    %4 = tpu.matmul %1, %3, %cst {dimension_numbers = #tpu.dot_dimension_numbers<[1], [0], [0], [1], [0, 0, 1, 1], [], []>} : vector<8x32xbf16>, vector<32x512xbf16>, vector<8x512xf32> -> vector<8x512xf32>
    %c0_5 = arith.constant 0 : index
    %c0_6 = arith.constant 0 : index
    %5 = vector.load %arg3[%c0_5, %c0_6] : memref<8x1xf32, #tpu.memory_space<vmem>>, vector<8x1xf32>
    %6 = vector.broadcast %5 : vector<8x1xf32> to vector<8x512xf32>
    %7 = arith.addf %4, %6 : vector<8x512xf32>
    %cst_7 = arith.constant 0.000000e+00 : f32
    %8 = vector.broadcast %cst_7 : f32 to vector<8x512xf32>
    %9 = arith.cmpf oge, %7, %8 : vector<8x512xf32>
    %cst_8 = arith.constant 2.000000e-01 : f32
    %10 = vector.broadcast %cst_8 : f32 to vector<8x512xf32>
    %11 = arith.mulf %10, %7 : vector<8x512xf32>
    %12 = arith.select %9, %7, %11 : vector<8x512xi1>, vector<8x512xf32>
    %c0_9 = arith.constant 0 : index
    %c0_10 = arith.constant 0 : index
    %c0_11 = arith.constant 0 : index
    %13 = vector.load %arg4[%c0_9, %c0_10, %c0_11] : memref<1x8x512xf32, #tpu.memory_space<vmem>>, vector<1x8x512xf32>
    %14 = vector.shape_cast %13 : vector<1x8x512xf32> to vector<8x512xf32>
    %15 = vector.shape_cast %12 : vector<8x512xf32> to vector<1x8x512xf32>
    tpu.vector_store %arg4[%c0_9, %c0_10, %c0_11], %15 {strides = array<i32>} : memref<1x8x512xf32, #tpu.memory_space<vmem>>, vector<1x8x512xf32>,
    return
  }
  func.func @transform_0(%arg0: i32) -> (i32, i32, i32) {
    %c0_i32 = arith.constant 0 : i32
    %c0_i32_0 = arith.constant 0 : i32
    %c0_i32_1 = arith.constant 0 : i32
    return %arg0, %c0_i32, %c0_i32_0 : i32, i32, i32
  }
  func.func @transform_1(%arg0: i32) -> (i32, i32, i32) {
    %c0_i32 = arith.constant 0 : i32
    %c0_i32_0 = arith.constant 0 : i32
    %c0_i32_1 = arith.constant 0 : i32
    return %arg0, %c0_i32, %c0_i32_0 : i32, i32, i32
  }
  func.func @transform_2(%arg0: i32) -> (i32, i32) {
    %c0_i32 = arith.constant 0 : i32
    %c0_i32_0 = arith.constant 0 : i32
    %c0_i32_1 = arith.constant 0 : i32
    return %c0_i32, %c0_i32_0 : i32, i32
  }
  func.func @transform_3(%arg0: i32) -> (i32, i32, i32) {
    %c0_i32 = arith.constant 0 : i32
    %c0_i32_0 = arith.constant 0 : i32
    %c0_i32_1 = arith.constant 0 : i32
    return %arg0, %c0_i32, %c0_i32_0 : i32, i32, i32
  }
}

</mosaic_0001>

<bundles_post_ra>
// kernel: squeeze.1
= control target key start
LH: loop header
LB: loop body
LE: loop exit
PB: predicated region body
PF: predicated region fallthrough
CT: control target
= control target key end

     0   :  { %vm94_vm0 = vcmask 1047556   ;;  %vm66_vm1 = vcmask 31744   ;;  %s1446_s14 = smov 116   ;;  %s1447_s15 = smov 120   ;;  %v1476_v26 = vmov 0.0   ;;  %s2044_s0 = inlined_call_operand.vmem [shape: bf16[1,2,512], index: 0, kind: input, shape index: {}]   ;;  %s2045_s1 = inlined_call_operand.vmem [shape: bf16[2,32,4,4], index: 1, kind: output, shape index: {}]  }
   0x1   :  { %v1347_v0 = vld [vmem:[%s2044_s0 + $0x3] sm:$0x1]  ;;  %v1348_v1 = vld [vmem:[%s2044_s0 + $0x2] sm:$0x1]  ;;  %v1349_v2 = vld [vmem:[%s2044_s0 + $0x1] sm:$0x1] }
   0x2   :  { %v17_v3 = vunpack.c.l.bf16 %v1347_v0  ;;  %v33_v4 = vunpack.c.l.bf16 %v1348_v1  ;;  %v48_v5 = vunpack.c.l.bf16 %v1349_v2  ;;  %v61_v6 = vld [vmem:[%s2044_s0] sm:$0x1]  ;;  %s1445_s0 = smov 124   ;;  %s1448_s16 = smov 112  }
   0x3   :  { %v62_v7 = vunpack.c.l.bf16 %v61_v6  ;;  %s1449_s17 = smov 108   ;;  %s1450_s18 = smov 104  }
   0x4   :  { %20 = vst [vmem:[#allocation1 + $0x18] sm:$0x3] %v17_v3  ;;  %36 = vst [vmem:[#allocation1 + $0x10] sm:$0x3] %v33_v4  ;;  %s1451_s19 = smov 100   ;;  %s1452_s20 = smov 96  }
   0x5   :  { %51 = vst [vmem:[#allocation1 + $0x8] sm:$0x3] %v48_v5  ;;  %64 = vst [vmem:[#allocation1] sm:$0x3] %v62_v7  ;;  %s1453_s21 = smov 92   ;;  %s1454_s22 = smov 88  }
   0x6   :  { %s1455_s23 = smov 84   ;;  %s1456_s24 = smov 80  }
   0x7   :  { %s1457_s25 = smov 76   ;;  %s1458_s26 = smov 72  }
   0x8   :  { %s1459_s27 = smov 68   ;;  %s1460_s28 = smov 64  }
   0x9   :  { %s1461_s29 = smov 60   ;;  %s1462_s30 = smov 56  }
   0xa   :  { %s1463_s2 = smov 52   ;;  %s1464_s3 = smov 48  }
   0xb   :  { %v93_v8 = vld.sshfl [vmem:[#allocation1 + $0x10] sm:$0xff pattern:$0x98100000]   ;;  %s1465_s4 = smov 44   ;;  %s1466_s5 = smov 40  }
   0xc   :  { %v91_v9 = vld.sshfl [vmem:[#allocation1] sm:$0xff pattern:$0x99999810]   ;;  %v78_v12 = vld [vmem:[#allocation1 + $0x10] sm:$0x3]   ;;  %s1467_s6 = smov 36  }
   0xd   :  { %v1499_v10 = vsel %vm94_vm0, %v93_v8, %v91_v9  ;;  %v71_v11 = vld [vmem:[#allocation1 + $0x8] sm:$0x3]   ;;  %81 = vst.msk [vmem:[#allocation0 + $0x80] sm:$0x1] %vm66_vm1, %v78_v12   ;;  %83 = vst.msk [vmem:[#allocation0 + $0x17f] sm:$0x2] %vm66_vm1, %v78_v12  }
   0xe   :  { %96 = vrot.lane.b32.xlu0 %v1499_v10, %s1445_s0  ;;  %144 = vrot.lane.b32.xlu1 %v1499_v10, %s1446_s14  ;;  %76 = vst.msk [vmem:[#allocation0 + $0x13f] sm:$0x2] %vm66_vm1, %v71_v11   ;;  %v85_v13 = vld [vmem:[#allocation1 + $0x18] sm:$0x3]   ;;  %74 = vst.msk [vmem:[#allocation0 + $0x40] sm:$0x1] %vm66_vm1, %v71_v11  }
   0xf   :  { %v65_v14 = vld [vmem:[#allocation1] sm:$0x3]   ;;  %90 = vst.msk [vmem:[#allocation0 + $0x1bf] sm:$0x2] %vm66_vm1, %v85_v13   ;;  %88 = vst.msk [vmem:[#allocation0 + $0xc0] sm:$0x1] %vm66_vm1, %v85_v13  }
  0x10   :  { %67 = vst.msk [vmem:[#allocation0] sm:$0x1] %vm66_vm1, %v65_v14   ;;  %69 = vst.msk [vmem:[#allocation0 + $0xff] sm:$0x2] %vm66_vm1, %v65_v14   ;;  %s1468_s7 = smov 32   ;;  %s1469_s8 = smov 28  }
  0x11   :  { %s1470_s9 = smov 24   ;;  %s1471_s10 = smov 20  }
  0x12   :  { %120 = vrot.lane.b32.xlu0 %v1499_v10, %s1447_s15  ;;  %168 = vrot.lane.b32.xlu1 %v1499_v10, %s1448_s16  ;;  %s1472_s11 = smov 16   ;;  %s1473_s12 = smov 12  }
  0x13   :  { %s1474_s13 = smov 8   ;;  %s1475_s0 = smov 4  }
  0x16   :  { %192 = vrot.lane.b32.xlu0 %v1499_v10, %s1449_s17  ;;  %216 = vrot.lane.b32.xlu1 %v1499_v10, %s1450_s18 }
  0x1a   :  { %240 = vrot.lane.b32.xlu0 %v1499_v10, %s1451_s19  ;;  %264 = vrot.lane.b32.xlu1 %v1499_v10, %s1452_s20 }
  0x1e   :  { %288 = vrot.lane.b32.xlu0 %v1499_v10, %s1453_s21  ;;  %312 = vrot.lane.b32.xlu1 %v1499_v10, %s1454_s22 }
  0x22   :  { %336 = vrot.lane.b32.xlu0 %v1499_v10, %s1455_s23  ;;  %360 = vrot.lane.b32.xlu1 %v1499_v10, %s1456_s24 }
  0x26   :  { %384 = vrot.lane.b32.xlu0 %v1499_v10, %s1457_s25  ;;  %408 = vrot.lane.b32.xlu1 %v1499_v10, %s1458_s26 }
  0x2a   :  { %432 = vrot.lane.b32.xlu0 %v1499_v10, %s1459_s27  ;;  %456 = vrot.lane.b32.xlu1 %v1499_v10, %s1460_s28 }
  0x2e   :  { %480 = vrot.lane.b32.xlu0 %v1499_v10, %s1461_s29  ;;  %504 = vrot.lane.b32.xlu1 %v1499_v10, %s1462_s30 }
  0x32   :  { %528 = vrot.lane.b32.xlu0 %v1499_v10, %s1463_s2  ;;  %552 = vrot.lane.b32.xlu1 %v1499_v10, %s1464_s3 }
  0x36   :  { %576 = vrot.lane.b32.xlu0 %v1499_v10, %s1465_s4  ;;  %600 = vrot.lane.b32.xlu1 %v1499_v10, %s1466_s5 }
  0x3a   :  { %624 = vrot.lane.b32.xlu0 %v1499_v10, %s1467_s6  ;;  %648 = vrot.lane.b32.xlu1 %v1499_v10, %s1468_s7 }
  0x3e   :  { %672 = vrot.lane.b32.xlu0 %v1499_v10, %s1469_s8  ;;  %696 = vrot.lane.b32.xlu1 %v1499_v10, %s1470_s9 }
  0x42   :  { %720 = vrot.lane.b32.xlu0 %v1499_v10, %s1471_s10  ;;  %744 = vrot.lane.b32.xlu1 %v1499_v10, %s1472_s11 }
  0x46   :  { %768 = vrot.lane.b32.xlu0 %v1499_v10, %s1473_s12  ;;  %792 = vrot.lane.b32.xlu1 %v1499_v10, %s1474_s13 }
  0x4a   :  { %816 = vrot.lane.b32.xlu0 %v1499_v10, %s1475_s0 }
  0x80   :  { %v97_v15 = vpop.permute.xlu0 %96   ;;  %v145_v16 = vpop.permute.xlu1 %144  }
  0x81   :  { %100 = vst.msk [vmem:[#allocation0 + $0x1] sm:$0x1] %vm66_vm1, %v97_v15   ;;  %102 = vst.msk [vmem:[#allocation0 + $0x100] sm:$0x2] %vm66_vm1, %v97_v15  }
  0x82   :  { %104 = vst.msk [vmem:[#allocation0 + $0x3f] sm:$0x4] %vm66_vm1, %v97_v15   ;;  %106 = vst.msk [vmem:[#allocation0 + $0x13e] sm:$0x8] %vm66_vm1, %v97_v15  }
  0x83   :  { %108 = vst.msk [vmem:[#allocation0 + $0x7d] sm:$0x10] %vm66_vm1, %v97_v15   ;;  %110 = vst.msk [vmem:[#allocation0 + $0x17c] sm:$0x20] %vm66_vm1, %v97_v15  }
  0x84   :  { %112 = vst.msk [vmem:[#allocation0 + $0xbb] sm:$0x40] %vm66_vm1, %v97_v15   ;;  %114 = vst.msk [vmem:[#allocation0 + $0x1ba] sm:$0x80] %vm66_vm1, %v97_v15   ;;  %v121_v17 = vpop.permute.xlu0 %120   ;;  %v169_v18 = vpop.permute.xlu1 %168  }
  0x85   :  { %148 = vst.msk [vmem:[#allocation0 + $0x3] sm:$0x1] %vm66_vm1, %v145_v16   ;;  %150 = vst.msk [vmem:[#allocation0 + $0x102] sm:$0x2] %vm66_vm1, %v145_v16  }
  0x86   :  { %152 = vst.msk [vmem:[#allocation0 + $0x41] sm:$0x4] %vm66_vm1, %v145_v16   ;;  %154 = vst.msk [vmem:[#allocation0 + $0x140] sm:$0x8] %vm66_vm1, %v145_v16  }
  0x87   :  { %156 = vst.msk [vmem:[#allocation0 + $0x7f] sm:$0x10] %vm66_vm1, %v145_v16   ;;  %158 = vst.msk [vmem:[#allocation0 + $0x17e] sm:$0x20] %vm66_vm1, %v145_v16  }
  0x88   :  { %160 = vst.msk [vmem:[#allocation0 + $0xbd] sm:$0x40] %vm66_vm1, %v145_v16   ;;  %162 = vst.msk [vmem:[#allocation0 + $0x1bc] sm:$0x80] %vm66_vm1, %v145_v16   ;;  %v193_v19 = vpop.permute.xlu0 %192   ;;  %v217_v20 = vpop.permute.xlu1 %216  }
  0x89   :  { %124 = vst.msk [vmem:[#allocation0 + $0x2] sm:$0x1] %vm66_vm1, %v121_v17   ;;  %126 = vst.msk [vmem:[#allocation0 + $0x101] sm:$0x2] %vm66_vm1, %v121_v17  }
  0x8a   :  { %128 = vst.msk [vmem:[#allocation0 + $0x40] sm:$0x4] %vm66_vm1, %v121_v17   ;;  %130 = vst.msk [vmem:[#allocation0 + $0x13f] sm:$0x8] %vm66_vm1, %v121_v17  }
  0x8b   :  { %132 = vst.msk [vmem:[#allocation0 + $0x7e] sm:$0x10] %vm66_vm1, %v121_v17   ;;  %134 = vst.msk [vmem:[#allocation0 + $0x17d] sm:$0x20] %vm66_vm1, %v121_v17  }
  0x8c   :  { %136 = vst.msk [vmem:[#allocation0 + $0xbc] sm:$0x40] %vm66_vm1, %v121_v17   ;;  %138 = vst.msk [vmem:[#allocation0 + $0x1bb] sm:$0x80] %vm66_vm1, %v121_v17   ;;  %v241_v24 = vpop.permute.xlu0 %240   ;;  %v265_v25 = vpop.permute.xlu1 %264  }
  0x8d   :  { %172 = vst.msk [vmem:[#allocation0 + $0x8] sm:$0x1] %vm66_vm1, %v169_v18   ;;  %174 = vst.msk [vmem:[#allocation0 + $0x107] sm:$0x2] %vm66_vm1, %v169_v18  }
  0x8e   :  { %176 = vst.msk [vmem:[#allocation0 + $0x46] sm:$0x4] %vm66_vm1, %v169_v18   ;;  %178 = vst.msk [vmem:[#allocation0 + $0x145] sm:$0x8] %vm66_vm1, %v169_v18  }
  0x8f   :  { %180 = vst.msk [vmem:[#allocation0 + $0x84] sm:$0x10] %vm66_vm1, %v169_v18   ;;  %182 = vst.msk [vmem:[#allocation0 + $0x183] sm:$0x20] %vm66_vm1, %v169_v18  }
  0x90   :  { %184 = vst.msk [vmem:[#allocation0 + $0xc2] sm:$0x40] %vm66_vm1, %v169_v18   ;;  %186 = vst.msk [vmem:[#allocation0 + $0x1c1] sm:$0x80] %vm66_vm1, %v169_v18   ;;  %v1060_v22 = vld [vmem:[#allocation0 + $0x100] sm:$0xf]  ;;  %v289_v40 = vpop.permute.xlu0 %288   ;;  %v313_v41 = vpop.permute.xlu1 %312  }
  0x91   :  { %196 = vst.msk [vmem:[#allocation0 + $0x9] sm:$0x1] %vm66_vm1, %v193_v19   ;;  %198 = vst.msk [vmem:[#allocation0 + $0x108] sm:$0x2] %vm66_vm1, %v193_v19   ;;  %v892_v21 = vld [vmem:[#allocation0 + $0x40] sm:$0xf]  ;;  %v1061_v28 = vpack.c.bf16 %v1476_v26, %v1060_v22 }
  0x92   :  { %200 = vst.msk [vmem:[#allocation0 + $0x47] sm:$0x4] %vm66_vm1, %v193_v19   ;;  %202 = vst.msk [vmem:[#allocation0 + $0x146] sm:$0x8] %vm66_vm1, %v193_v19   ;;  %v839_v23 = vld [vmem:[#allocation0] sm:$0xf]  ;;  %v893_v27 = vpack.c.bf16 %v1476_v26, %v892_v21 }
  0x93   :  { %204 = vst.msk [vmem:[#allocation0 + $0x85] sm:$0x10] %vm66_vm1, %v193_v19   ;;  %206 = vst.msk [vmem:[#allocation0 + $0x184] sm:$0x20] %vm66_vm1, %v193_v19   ;;  %v948_v29 = vld [vmem:[#allocation0 + $0x80] sm:$0xf]  ;;  %v840_v32 = vpack.c.bf16 %v1476_v26, %v839_v23 }
  0x94   :  { %208 = vst.msk [vmem:[#allocation0 + $0xc3] sm:$0x40] %vm66_vm1, %v193_v19   ;;  %210 = vst.msk [vmem:[#allocation0 + $0x1c2] sm:$0x80] %vm66_vm1, %v193_v19   ;;  %v1004_v30 = vld [vmem:[#allocation0 + $0xc0] sm:$0xf]  ;;  %v949_v35 = vpack.c.bf16 %v1476_v26, %v948_v29  ;;  %v337_v45 = vpop.permute.xlu0 %336   ;;  %v361_v46 = vpop.permute.xlu1 %360  }
  0x95   :  { %220 = vst.msk [vmem:[#allocation0 + $0xa] sm:$0x1] %vm66_vm1, %v217_v20   ;;  %222 = vst.msk [vmem:[#allocation0 + $0x109] sm:$0x2] %vm66_vm1, %v217_v20   ;;  %v1116_v31 = vld [vmem:[#allocation0 + $0x140] sm:$0xf]  ;;  %v1005_v36 = vpack.c.bf16 %v1476_v26, %v1004_v30 }
  0x96   :  { %224 = vst.msk [vmem:[#allocation0 + $0x48] sm:$0x4] %vm66_vm1, %v217_v20   ;;  %226 = vst.msk [vmem:[#allocation0 + $0x147] sm:$0x8] %vm66_vm1, %v217_v20   ;;  %v1172_v33 = vld [vmem:[#allocation0 + $0x180] sm:$0xf]  ;;  %v1117_v37 = vpack.c.bf16 %v1476_v26, %v1116_v31 }
  0x97   :  { %228 = vst.msk [vmem:[#allocation0 + $0x86] sm:$0x10] %vm66_vm1, %v217_v20   ;;  %230 = vst.msk [vmem:[#allocation0 + $0x185] sm:$0x20] %vm66_vm1, %v217_v20   ;;  %v1228_v34 = vld [vmem:[#allocation0 + $0x1c0] sm:$0xf]  ;;  %v1173_v38 = vpack.c.bf16 %v1476_v26, %v1172_v33 }
  0x98   :  { %232 = vst.msk [vmem:[#allocation0 + $0xc4] sm:$0x40] %vm66_vm1, %v217_v20   ;;  %234 = vst.msk [vmem:[#allocation0 + $0x1c3] sm:$0x80] %vm66_vm1, %v217_v20   ;;  %v1229_v39 = vpack.c.bf16 %v1476_v26, %v1228_v34  ;;  %v385_v60 = vpop.permute.xlu0 %384   ;;  %v409_v61 = vpop.permute.xlu1 %408  }
  0x99   :  { %244 = vst.msk [vmem:[#allocation0 + $0xb] sm:$0x1] %vm66_vm1, %v241_v24   ;;  %246 = vst.msk [vmem:[#allocation0 + $0x10a] sm:$0x2] %vm66_vm1, %v241_v24  }
  0x9a   :  { %248 = vst.msk [vmem:[#allocation0 + $0x49] sm:$0x4] %vm66_vm1, %v241_v24   ;;  %250 = vst.msk [vmem:[#allocation0 + $0x148] sm:$0x8] %vm66_vm1, %v241_v24  }
  0x9b   :  { %252 = vst.msk [vmem:[#allocation0 + $0x87] sm:$0x10] %vm66_vm1, %v241_v24   ;;  %254 = vst.msk [vmem:[#allocation0 + $0x186] sm:$0x20] %vm66_vm1, %v241_v24  }
  0x9c   :  { %256 = vst.msk [vmem:[#allocation0 + $0xc5] sm:$0x40] %vm66_vm1, %v241_v24   ;;  %258 = vst.msk [vmem:[#allocation0 + $0x1c4] sm:$0x80] %vm66_vm1, %v241_v24   ;;  %v433_v1 = vpop.permute.xlu0 %432   ;;  %v457_v2 = vpop.permute.xlu1 %456  }
  0x9d   :  { %268 = vst.msk [vmem:[#allocation0 + $0x10] sm:$0x1] %vm66_vm1, %v265_v25   ;;  %270 = vst.msk [vmem:[#allocation0 + $0x10f] sm:$0x2] %vm66_vm1, %v265_v25  }
  0x9e   :  { %272 = vst.msk [vmem:[#allocation0 + $0x4e] sm:$0x4] %vm66_vm1, %v265_v25   ;;  %274 = vst.msk [vmem:[#allocation0 + $0x14d] sm:$0x8] %vm66_vm1, %v265_v25  }
  0x9f   :  { %276 = vst.msk [vmem:[#allocation0 + $0x8c] sm:$0x10] %vm66_vm1, %v265_v25   ;;  %278 = vst.msk [vmem:[#allocation0 + $0x18b] sm:$0x20] %vm66_vm1, %v265_v25  }
  0xa0   :  { %280 = vst.msk [vmem:[#allocation0 + $0xca] sm:$0x40] %vm66_vm1, %v265_v25   ;;  %282 = vst.msk [vmem:[#allocation0 + $0x1c9] sm:$0x80] %vm66_vm1, %v265_v25   ;;  %v844_v43 = vld [vmem:[#allocation0 + $0x8] sm:$0xf]  ;;  %v481_v16 = vpop.permute.xlu0 %480   ;;  %v505_v17 = vpop.permute.xlu1 %504  }
  0xa1   :  { %1357 = vst [vmem:[%s2045_s1 + $0x10] sm:$0x3] %v893_v27  ;;  %1381 = vst [vmem:[%s2045_s1 + $0x40] sm:$0x3] %v1061_v28  ;;  %v899_v42 = vld [vmem:[#allocation0 + $0x48] sm:$0xf]  ;;  %v845_v51 = vpack.c.bf16 %v1476_v26, %v844_v43 }
  0xa2   :  { %842 = vst [vmem:[%s2045_s1] sm:$0x3] %v840_v32  ;;  %1365 = vst [vmem:[%s2045_s1 + $0x20] sm:$0x3] %v949_v35  ;;  %v955_v44 = vld [vmem:[#allocation0 + $0x88] sm:$0xf]  ;;  %v900_v47 = vpack.c.bf16 %v1476_v26, %v899_v42 }
  0xa3   :  { %1373 = vst [vmem:[%s2045_s1 + $0x30] sm:$0x3] %v1005_v36  ;;  %1389 = vst [vmem:[%s2045_s1 + $0x50] sm:$0x3] %v1117_v37  ;;  %v1011_v48 = vld [vmem:[#allocation0 + $0xc8] sm:$0xf]  ;;  %v956_v52 = vpack.c.bf16 %v1476_v26, %v955_v44 }
  0xa4   :  { %1397 = vst [vmem:[%s2045_s1 + $0x60] sm:$0x3] %v1173_v38  ;;  %1405 = vst [vmem:[%s2045_s1 + $0x70] sm:$0x3] %v1229_v39  ;;  %v1067_v49 = vld [vmem:[#allocation0 + $0x108] sm:$0xf]  ;;  %v1012_v55 = vpack.c.bf16 %v1476_v26, %v1011_v48  ;;  %v529_v21 = vpop.permute.xlu0 %528   ;;  %v553_v22 = vpop.permute.xlu1 %552  }
  0xa5   :  { %292 = vst.msk [vmem:[#allocation0 + $0x11] sm:$0x1] %vm66_vm1, %v289_v40   ;;  %294 = vst.msk [vmem:[#allocation0 + $0x110] sm:$0x2] %vm66_vm1, %v289_v40   ;;  %v1123_v50 = vld [vmem:[#allocation0 + $0x148] sm:$0xf]  ;;  %v1068_v56 = vpack.c.bf16 %v1476_v26, %v1067_v49 }
  0xa6   :  { %296 = vst.msk [vmem:[#allocation0 + $0x4f] sm:$0x4] %vm66_vm1, %v289_v40   ;;  %298 = vst.msk [vmem:[#allocation0 + $0x14e] sm:$0x8] %vm66_vm1, %v289_v40   ;;  %v1179_v53 = vld [vmem:[#allocation0 + $0x188] sm:$0xf]  ;;  %v1124_v57 = vpack.c.bf16 %v1476_v26, %v1123_v50 }
  0xa7   :  { %300 = vst.msk [vmem:[#allocation0 + $0x8d] sm:$0x10] %vm66_vm1, %v289_v40   ;;  %302 = vst.msk [vmem:[#allocation0 + $0x18c] sm:$0x20] %vm66_vm1, %v289_v40   ;;  %v1235_v54 = vld [vmem:[#allocation0 + $0x1c8] sm:$0xf]  ;;  %v1180_v58 = vpack.c.bf16 %v1476_v26, %v1179_v53 }
  0xa8   :  { %304 = vst.msk [vmem:[#allocation0 + $0xcb] sm:$0x40] %vm66_vm1, %v289_v40   ;;  %306 = vst.msk [vmem:[#allocation0 + $0x1ca] sm:$0x80] %vm66_vm1, %v289_v40   ;;  %v1236_v59 = vpack.c.bf16 %v1476_v26, %v1235_v54  ;;  %v577_v37 = vpop.permute.xlu0 %576   ;;  %v601_v38 = vpop.permute.xlu1 %600  }
  0xa9   :  { %316 = vst.msk [vmem:[#allocation0 + $0x12] sm:$0x1] %vm66_vm1, %v313_v41   ;;  %318 = vst.msk [vmem:[#allocation0 + $0x111] sm:$0x2] %vm66_vm1, %v313_v41  }
  0xaa   :  { %320 = vst.msk [vmem:[#allocation0 + $0x50] sm:$0x4] %vm66_vm1, %v313_v41   ;;  %322 = vst.msk [vmem:[#allocation0 + $0x14f] sm:$0x8] %vm66_vm1, %v313_v41  }
  0xab   :  { %324 = vst.msk [vmem:[#allocation0 + $0x8e] sm:$0x10] %vm66_vm1, %v313_v41   ;;  %326 = vst.msk [vmem:[#allocation0 + $0x18d] sm:$0x20] %vm66_vm1, %v313_v41  }
  0xac   :  { %328 = vst.msk [vmem:[#allocation0 + $0xcc] sm:$0x40] %vm66_vm1, %v313_v41   ;;  %330 = vst.msk [vmem:[#allocation0 + $0x1cb] sm:$0x80] %vm66_vm1, %v313_v41   ;;  %v625_v42 = vpop.permute.xlu0 %624   ;;  %v649_v43 = vpop.permute.xlu1 %648  }
  0xad   :  { %340 = vst.msk [vmem:[#allocation0 + $0x13] sm:$0x1] %vm66_vm1, %v337_v45   ;;  %342 = vst.msk [vmem:[#allocation0 + $0x112] sm:$0x2] %vm66_vm1, %v337_v45  }
  0xae   :  { %344 = vst.msk [vmem:[#allocation0 + $0x51] sm:$0x4] %vm66_vm1, %v337_v45   ;;  %346 = vst.msk [vmem:[#allocation0 + $0x150] sm:$0x8] %vm66_vm1, %v337_v45  }
  0xaf   :  { %348 = vst.msk [vmem:[#allocation0 + $0x8f] sm:$0x10] %vm66_vm1, %v337_v45   ;;  %350 = vst.msk [vmem:[#allocation0 + $0x18e] sm:$0x20] %vm66_vm1, %v337_v45  }
  0xb0   :  { %352 = vst.msk [vmem:[#allocation0 + $0xcd] sm:$0x40] %vm66_vm1, %v337_v45   ;;  %354 = vst.msk [vmem:[#allocation0 + $0x1cc] sm:$0x80] %vm66_vm1, %v337_v45  }
  0xb1   :  { %364 = vst.msk [vmem:[#allocation0 + $0x18] sm:$0x1] %vm66_vm1, %v361_v46   ;;  %366 = vst.msk [vmem:[#allocation0 + $0x117] sm:$0x2] %vm66_vm1, %v361_v46  }
  0xb2   :  { %368 = vst.msk [vmem:[#allocation0 + $0x56] sm:$0x4] %vm66_vm1, %v361_v46   ;;  %370 = vst.msk [vmem:[#allocation0 + $0x155] sm:$0x8] %vm66_vm1, %v361_v46  }
  0xb3   :  { %372 = vst.msk [vmem:[#allocation0 + $0x94] sm:$0x10] %vm66_vm1, %v361_v46   ;;  %374 = vst.msk [vmem:[#allocation0 + $0x193] sm:$0x20] %vm66_vm1, %v361_v46  }
  0xb4   :  { %376 = vst.msk [vmem:[#allocation0 + $0xd2] sm:$0x40] %vm66_vm1, %v361_v46   ;;  %378 = vst.msk [vmem:[#allocation0 + $0x1d1] sm:$0x80] %vm66_vm1, %v361_v46   ;;  %v850_v63 = vld [vmem:[#allocation0 + $0x10] sm:$0xf] }
  0xb5   :  { %1358 = vst [vmem:[%s2045_s1 + $0x12] sm:$0x3] %v900_v47  ;;  %1350 = vst [vmem:[%s2045_s1 + $0x2] sm:$0x3] %v845_v51  ;;  %v906_v0 = vld [vmem:[#allocation0 + $0x50] sm:$0xf]  ;;  %v851_v7 = vpack.c.bf16 %v1476_v26, %v850_v63 }
  0xb6   :  { %1366 = vst [vmem:[%s2045_s1 + $0x22] sm:$0x3] %v956_v52  ;;  %1374 = vst [vmem:[%s2045_s1 + $0x32] sm:$0x3] %v1012_v55  ;;  %v962_v62 = vld [vmem:[#allocation0 + $0x90] sm:$0xf]  ;;  %v907_v8 = vpack.c.bf16 %v1476_v26, %v906_v0 }
  0xb7   :  { %1382 = vst [vmem:[%s2045_s1 + $0x42] sm:$0x3] %v1068_v56  ;;  %1390 = vst [vmem:[%s2045_s1 + $0x52] sm:$0x3] %v1124_v57  ;;  %v963_v3 = vpack.c.bf16 %v1476_v26, %v962_v62  ;;  %v1018_v4 = vld [vmem:[#allocation0 + $0xd0] sm:$0xf]  ;;  %v673_v57 = vpop.permute.xlu0 %672  }
  0xb8   :  { %1398 = vst [vmem:[%s2045_s1 + $0x62] sm:$0x3] %v1180_v58  ;;  %1406 = vst [vmem:[%s2045_s1 + $0x72] sm:$0x3] %v1236_v59  ;;  %v1074_v5 = vld [vmem:[#allocation0 + $0x110] sm:$0xf]  ;;  %v1019_v11 = vpack.c.bf16 %v1476_v26, %v1018_v4  ;;  %v697_v58 = vpop.permute.xlu1 %696  }
  0xb9   :  { %388 = vst.msk [vmem:[#allocation0 + $0x19] sm:$0x1] %vm66_vm1, %v385_v60   ;;  %390 = vst.msk [vmem:[#allocation0 + $0x118] sm:$0x2] %vm66_vm1, %v385_v60   ;;  %v1130_v6 = vld [vmem:[#allocation0 + $0x150] sm:$0xf]  ;;  %v1075_v12 = vpack.c.bf16 %v1476_v26, %v1074_v5 }
  0xba   :  { %392 = vst.msk [vmem:[#allocation0 + $0x57] sm:$0x4] %vm66_vm1, %v385_v60   ;;  %394 = vst.msk [vmem:[#allocation0 + $0x156] sm:$0x8] %vm66_vm1, %v385_v60   ;;  %v1186_v9 = vld [vmem:[#allocation0 + $0x190] sm:$0xf]  ;;  %v1131_v13 = vpack.c.bf16 %v1476_v26, %v1130_v6 }
  0xbb   :  { %396 = vst.msk [vmem:[#allocation0 + $0x95] sm:$0x10] %vm66_vm1, %v385_v60   ;;  %398 = vst.msk [vmem:[#allocation0 + $0x194] sm:$0x20] %vm66_vm1, %v385_v60   ;;  %v1242_v10 = vld [vmem:[#allocation0 + $0x1d0] sm:$0xf]  ;;  %v1187_v14 = vpack.c.bf16 %v1476_v26, %v1186_v9  ;;  %v721_v62 = vpop.permute.xlu0 %720  }
  0xbc   :  { %400 = vst.msk [vmem:[#allocation0 + $0xd3] sm:$0x40] %vm66_vm1, %v385_v60   ;;  %402 = vst.msk [vmem:[#allocation0 + $0x1d2] sm:$0x80] %vm66_vm1, %v385_v60   ;;  %v1243_v15 = vpack.c.bf16 %v1476_v26, %v1242_v10  ;;  %v745_v63 = vpop.permute.xlu1 %744  }
  0xbd   :  { %412 = vst.msk [vmem:[#allocation0 + $0x1a] sm:$0x1] %vm66_vm1, %v409_v61   ;;  %414 = vst.msk [vmem:[#allocation0 + $0x119] sm:$0x2] %vm66_vm1, %v409_v61  }
  0xbe   :  { %416 = vst.msk [vmem:[#allocation0 + $0x58] sm:$0x4] %vm66_vm1, %v409_v61   ;;  %418 = vst.msk [vmem:[#allocation0 + $0x157] sm:$0x8] %vm66_vm1, %v409_v61  }
  0xbf   :  { %420 = vst.msk [vmem:[#allocation0 + $0x96] sm:$0x10] %vm66_vm1, %v409_v61   ;;  %422 = vst.msk [vmem:[#allocation0 + $0x195] sm:$0x20] %vm66_vm1, %v409_v61  }
  0xc0   :  { %424 = vst.msk [vmem:[#allocation0 + $0xd4] sm:$0x40] %vm66_vm1, %v409_v61   ;;  %426 = vst.msk [vmem:[#allocation0 + $0x1d3] sm:$0x80] %vm66_vm1, %v409_v61  }
  0xc1   :  { %436 = vst.msk [vmem:[#allocation0 + $0x1b] sm:$0x1] %vm66_vm1, %v433_v1   ;;  %438 = vst.msk [vmem:[#allocation0 + $0x11a] sm:$0x2] %vm66_vm1, %v433_v1  }
  0xc2   :  { %440 = vst.msk [vmem:[#allocation0 + $0x59] sm:$0x4] %vm66_vm1, %v433_v1   ;;  %442 = vst.msk [vmem:[#allocation0 + $0x158] sm:$0x8] %vm66_vm1, %v433_v1  }
  0xc3   :  { %444 = vst.msk [vmem:[#allocation0 + $0x97] sm:$0x10] %vm66_vm1, %v433_v1   ;;  %446 = vst.msk [vmem:[#allocation0 + $0x196] sm:$0x20] %vm66_vm1, %v433_v1  }
  0xc4   :  { %448 = vst.msk [vmem:[#allocation0 + $0xd5] sm:$0x40] %vm66_vm1, %v433_v1   ;;  %450 = vst.msk [vmem:[#allocation0 + $0x1d4] sm:$0x80] %vm66_vm1, %v433_v1  }
  0xc5   :  { %460 = vst.msk [vmem:[#allocation0 + $0x20] sm:$0x1] %vm66_vm1, %v457_v2   ;;  %462 = vst.msk [vmem:[#allocation0 + $0x11f] sm:$0x2] %vm66_vm1, %v457_v2  }
  0xc6   :  { %464 = vst.msk [vmem:[#allocation0 + $0x5e] sm:$0x4] %vm66_vm1, %v457_v2   ;;  %466 = vst.msk [vmem:[#allocation0 + $0x15d] sm:$0x8] %vm66_vm1, %v457_v2  }
  0xc7   :  { %468 = vst.msk [vmem:[#allocation0 + $0x9c] sm:$0x10] %vm66_vm1, %v457_v2   ;;  %470 = vst.msk [vmem:[#allocation0 + $0x19b] sm:$0x20] %vm66_vm1, %v457_v2  }
  0xc8   :  { %472 = vst.msk [vmem:[#allocation0 + $0xda] sm:$0x40] %vm66_vm1, %v457_v2   ;;  %474 = vst.msk [vmem:[#allocation0 + $0x1d9] sm:$0x80] %vm66_vm1, %v457_v2   ;;  %v857_v28 = vld [vmem:[#allocation0 + $0x18] sm:$0xf] }
  0xc9   :  { %1367 = vst [vmem:[%s2045_s1 + $0x24] sm:$0x3] %v963_v3  ;;  %1351 = vst [vmem:[%s2045_s1 + $0x4] sm:$0x3] %v851_v7  ;;  %v913_v18 = vld [vmem:[#allocation0 + $0x58] sm:$0xf]  ;;  %v858_v33 = vpack.c.bf16 %v1476_v26, %v857_v28 }
  0xca   :  { %1359 = vst [vmem:[%s2045_s1 + $0x14] sm:$0x3] %v907_v8  ;;  %1375 = vst [vmem:[%s2045_s1 + $0x34] sm:$0x3] %v1019_v11  ;;  %v1193_v20 = vld [vmem:[#allocation0 + $0x198] sm:$0xf]  ;;  %v914_v23 = vpack.c.bf16 %v1476_v26, %v913_v18 }
  0xcb   :  { %1383 = vst [vmem:[%s2045_s1 + $0x44] sm:$0x3] %v1075_v12  ;;  %1391 = vst [vmem:[%s2045_s1 + $0x54] sm:$0x3] %v1131_v13  ;;  %v1025_v19 = vld [vmem:[#allocation0 + $0xd8] sm:$0xf]  ;;  %v1194_v25 = vpack.c.bf16 %v1476_v26, %v1193_v20  ;;  %v769_v13 = vpop.permute.xlu0 %768  }
  0xcc   :  { %1399 = vst [vmem:[%s2045_s1 + $0x64] sm:$0x3] %v1187_v14  ;;  %1407 = vst [vmem:[%s2045_s1 + $0x74] sm:$0x3] %v1243_v15  ;;  %v1026_v24 = vpack.c.bf16 %v1476_v26, %v1025_v19  ;;  %v1249_v27 = vld [vmem:[#allocation0 + $0x1d8] sm:$0xf]  ;;  %v793_v14 = vpop.permute.xlu1 %792  }
  0xcd   :  { %484 = vst.msk [vmem:[#allocation0 + $0x21] sm:$0x1] %vm66_vm1, %v481_v16   ;;  %486 = vst.msk [vmem:[#allocation0 + $0x120] sm:$0x2] %vm66_vm1, %v481_v16   ;;  %v969_v29 = vld [vmem:[#allocation0 + $0x98] sm:$0xf]  ;;  %v1250_v30 = vpack.c.bf16 %v1476_v26, %v1249_v27 }
  0xce   :  { %488 = vst.msk [vmem:[#allocation0 + $0x5f] sm:$0x4] %vm66_vm1, %v481_v16   ;;  %490 = vst.msk [vmem:[#allocation0 + $0x15e] sm:$0x8] %vm66_vm1, %v481_v16   ;;  %v1081_v31 = vld [vmem:[#allocation0 + $0x118] sm:$0xf]  ;;  %v970_v34 = vpack.c.bf16 %v1476_v26, %v969_v29 }
  0xcf   :  { %492 = vst.msk [vmem:[#allocation0 + $0x9d] sm:$0x10] %vm66_vm1, %v481_v16   ;;  %494 = vst.msk [vmem:[#allocation0 + $0x19c] sm:$0x20] %vm66_vm1, %v481_v16   ;;  %v1137_v32 = vld [vmem:[#allocation0 + $0x158] sm:$0xf]  ;;  %v1082_v35 = vpack.c.bf16 %v1476_v26, %v1081_v31  ;;  %v817_v18 = vpop.permute.xlu0 %816  }
  0xd0   :  { %496 = vst.msk [vmem:[#allocation0 + $0xdb] sm:$0x40] %vm66_vm1, %v481_v16   ;;  %498 = vst.msk [vmem:[#allocation0 + $0x1da] sm:$0x80] %vm66_vm1, %v481_v16   ;;  %v1138_v36 = vpack.c.bf16 %v1476_v26, %v1137_v32 }
  0xd1   :  { %508 = vst.msk [vmem:[#allocation0 + $0x22] sm:$0x1] %vm66_vm1, %v505_v17   ;;  %510 = vst.msk [vmem:[#allocation0 + $0x121] sm:$0x2] %vm66_vm1, %v505_v17  }
  0xd2   :  { %512 = vst.msk [vmem:[#allocation0 + $0x60] sm:$0x4] %vm66_vm1, %v505_v17   ;;  %514 = vst.msk [vmem:[#allocation0 + $0x15f] sm:$0x8] %vm66_vm1, %v505_v17  }
  0xd3   :  { %516 = vst.msk [vmem:[#allocation0 + $0x9e] sm:$0x10] %vm66_vm1, %v505_v17   ;;  %518 = vst.msk [vmem:[#allocation0 + $0x19d] sm:$0x20] %vm66_vm1, %v505_v17  }
  0xd4   :  { %520 = vst.msk [vmem:[#allocation0 + $0xdc] sm:$0x40] %vm66_vm1, %v505_v17   ;;  %522 = vst.msk [vmem:[#allocation0 + $0x1db] sm:$0x80] %vm66_vm1, %v505_v17  }
  0xd5   :  { %532 = vst.msk [vmem:[#allocation0 + $0x23] sm:$0x1] %vm66_vm1, %v529_v21   ;;  %534 = vst.msk [vmem:[#allocation0 + $0x122] sm:$0x2] %vm66_vm1, %v529_v21  }
  0xd6   :  { %536 = vst.msk [vmem:[#allocation0 + $0x61] sm:$0x4] %vm66_vm1, %v529_v21   ;;  %538 = vst.msk [vmem:[#allocation0 + $0x160] sm:$0x8] %vm66_vm1, %v529_v21  }
  0xd7   :  { %540 = vst.msk [vmem:[#allocation0 + $0x9f] sm:$0x10] %vm66_vm1, %v529_v21   ;;  %542 = vst.msk [vmem:[#allocation0 + $0x19e] sm:$0x20] %vm66_vm1, %v529_v21  }
  0xd8   :  { %544 = vst.msk [vmem:[#allocation0 + $0xdd] sm:$0x40] %vm66_vm1, %v529_v21   ;;  %546 = vst.msk [vmem:[#allocation0 + $0x1dc] sm:$0x80] %vm66_vm1, %v529_v21  }
  0xd9   :  { %556 = vst.msk [vmem:[#allocation0 + $0x28] sm:$0x1] %vm66_vm1, %v553_v22   ;;  %558 = vst.msk [vmem:[#allocation0 + $0x127] sm:$0x2] %vm66_vm1, %v553_v22  }
  0xda   :  { %560 = vst.msk [vmem:[#allocation0 + $0x66] sm:$0x4] %vm66_vm1, %v553_v22   ;;  %562 = vst.msk [vmem:[#allocation0 + $0x165] sm:$0x8] %vm66_vm1, %v553_v22  }
  0xdb   :  { %564 = vst.msk [vmem:[#allocation0 + $0xa4] sm:$0x10] %vm66_vm1, %v553_v22   ;;  %566 = vst.msk [vmem:[#allocation0 + $0x1a3] sm:$0x20] %vm66_vm1, %v553_v22  }
  0xdc   :  { %568 = vst.msk [vmem:[#allocation0 + $0xe2] sm:$0x40] %vm66_vm1, %v553_v22   ;;  %570 = vst.msk [vmem:[#allocation0 + $0x1e1] sm:$0x80] %vm66_vm1, %v553_v22   ;;  %v864_v39 = vld [vmem:[#allocation0 + $0x20] sm:$0xf] }
  0xdd   :  { %1360 = vst [vmem:[%s2045_s1 + $0x16] sm:$0x3] %v914_v23  ;;  %1376 = vst [vmem:[%s2045_s1 + $0x36] sm:$0x3] %v1026_v24  ;;  %v920_v40 = vld [vmem:[#allocation0 + $0x60] sm:$0xf]  ;;  %v865_v44 = vpack.c.bf16 %v1476_v26, %v864_v39 }
  0xde   :  { %1400 = vst [vmem:[%s2045_s1 + $0x66] sm:$0x3] %v1194_v25  ;;  %1408 = vst [vmem:[%s2045_s1 + $0x76] sm:$0x3] %v1250_v30  ;;  %v976_v41 = vld [vmem:[#allocation0 + $0xa0] sm:$0xf]  ;;  %v921_v45 = vpack.c.bf16 %v1476_v26, %v920_v40 }
  0xdf   :  { %1352 = vst [vmem:[%s2045_s1 + $0x6] sm:$0x3] %v858_v33  ;;  %1368 = vst [vmem:[%s2045_s1 + $0x26] sm:$0x3] %v970_v34  ;;  %v977_v46 = vpack.c.bf16 %v1476_v26, %v976_v41  ;;  %v1032_v47 = vld [vmem:[#allocation0 + $0xe0] sm:$0xf] }
  0xe0   :  { %1384 = vst [vmem:[%s2045_s1 + $0x46] sm:$0x3] %v1082_v35  ;;  %1392 = vst [vmem:[%s2045_s1 + $0x56] sm:$0x3] %v1138_v36  ;;  %v1200_v48 = vld [vmem:[#allocation0 + $0x1a0] sm:$0xf]  ;;  %v1033_v50 = vpack.c.bf16 %v1476_v26, %v1032_v47 }
  0xe1   :  { %580 = vst.msk [vmem:[#allocation0 + $0x29] sm:$0x1] %vm66_vm1, %v577_v37   ;;  %582 = vst.msk [vmem:[#allocation0 + $0x128] sm:$0x2] %vm66_vm1, %v577_v37   ;;  %v1256_v49 = vld [vmem:[#allocation0 + $0x1e0] sm:$0xf]  ;;  %v1201_v51 = vpack.c.bf16 %v1476_v26, %v1200_v48 }
  0xe2   :  { %584 = vst.msk [vmem:[#allocation0 + $0x67] sm:$0x4] %vm66_vm1, %v577_v37   ;;  %586 = vst.msk [vmem:[#allocation0 + $0x166] sm:$0x8] %vm66_vm1, %v577_v37   ;;  %v1257_v52 = vpack.c.bf16 %v1476_v26, %v1256_v49  ;;  %v1088_v53 = vld [vmem:[#allocation0 + $0x120] sm:$0xf] }
  0xe3   :  { %588 = vst.msk [vmem:[#allocation0 + $0xa5] sm:$0x10] %vm66_vm1, %v577_v37   ;;  %590 = vst.msk [vmem:[#allocation0 + $0x1a4] sm:$0x20] %vm66_vm1, %v577_v37   ;;  %v1144_v54 = vld [vmem:[#allocation0 + $0x160] sm:$0xf]  ;;  %v1089_v55 = vpack.c.bf16 %v1476_v26, %v1088_v53 }
  0xe4   :  { %592 = vst.msk [vmem:[#allocation0 + $0xe3] sm:$0x40] %vm66_vm1, %v577_v37   ;;  %594 = vst.msk [vmem:[#allocation0 + $0x1e2] sm:$0x80] %vm66_vm1, %v577_v37   ;;  %v1145_v56 = vpack.c.bf16 %v1476_v26, %v1144_v54 }
  0xe5   :  { %604 = vst.msk [vmem:[#allocation0 + $0x2a] sm:$0x1] %vm66_vm1, %v601_v38   ;;  %606 = vst.msk [vmem:[#allocation0 + $0x129] sm:$0x2] %vm66_vm1, %v601_v38  }
  0xe6   :  { %608 = vst.msk [vmem:[#allocation0 + $0x68] sm:$0x4] %vm66_vm1, %v601_v38   ;;  %610 = vst.msk [vmem:[#allocation0 + $0x167] sm:$0x8] %vm66_vm1, %v601_v38  }
  0xe7   :  { %612 = vst.msk [vmem:[#allocation0 + $0xa6] sm:$0x10] %vm66_vm1, %v601_v38   ;;  %614 = vst.msk [vmem:[#allocation0 + $0x1a5] sm:$0x20] %vm66_vm1, %v601_v38  }
  0xe8   :  { %616 = vst.msk [vmem:[#allocation0 + $0xe4] sm:$0x40] %vm66_vm1, %v601_v38   ;;  %618 = vst.msk [vmem:[#allocation0 + $0x1e3] sm:$0x80] %vm66_vm1, %v601_v38  }
  0xe9   :  { %628 = vst.msk [vmem:[#allocation0 + $0x2b] sm:$0x1] %vm66_vm1, %v625_v42   ;;  %630 = vst.msk [vmem:[#allocation0 + $0x12a] sm:$0x2] %vm66_vm1, %v625_v42  }
  0xea   :  { %632 = vst.msk [vmem:[#allocation0 + $0x69] sm:$0x4] %vm66_vm1, %v625_v42   ;;  %634 = vst.msk [vmem:[#allocation0 + $0x168] sm:$0x8] %vm66_vm1, %v625_v42  }
  0xeb   :  { %636 = vst.msk [vmem:[#allocation0 + $0xa7] sm:$0x10] %vm66_vm1, %v625_v42   ;;  %638 = vst.msk [vmem:[#allocation0 + $0x1a6] sm:$0x20] %vm66_vm1, %v625_v42  }
  0xec   :  { %640 = vst.msk [vmem:[#allocation0 + $0xe5] sm:$0x40] %vm66_vm1, %v625_v42   ;;  %642 = vst.msk [vmem:[#allocation0 + $0x1e4] sm:$0x80] %vm66_vm1, %v625_v42  }
  0xed   :  { %652 = vst.msk [vmem:[#allocation0 + $0x30] sm:$0x1] %vm66_vm1, %v649_v43   ;;  %654 = vst.msk [vmem:[#allocation0 + $0x12f] sm:$0x2] %vm66_vm1, %v649_v43  }
  0xee   :  { %656 = vst.msk [vmem:[#allocation0 + $0x6e] sm:$0x4] %vm66_vm1, %v649_v43   ;;  %658 = vst.msk [vmem:[#allocation0 + $0x16d] sm:$0x8] %vm66_vm1, %v649_v43  }
  0xef   :  { %660 = vst.msk [vmem:[#allocation0 + $0xac] sm:$0x10] %vm66_vm1, %v649_v43   ;;  %662 = vst.msk [vmem:[#allocation0 + $0x1ab] sm:$0x20] %vm66_vm1, %v649_v43  }
  0xf0   :  { %664 = vst.msk [vmem:[#allocation0 + $0xea] sm:$0x40] %vm66_vm1, %v649_v43   ;;  %666 = vst.msk [vmem:[#allocation0 + $0x1e9] sm:$0x80] %vm66_vm1, %v649_v43   ;;  %v1095_v60 = vld [vmem:[#allocation0 + $0x128] sm:$0xf] }
  0xf1   :  { %1353 = vst [vmem:[%s2045_s1 + $0x8] sm:$0x3] %v865_v44  ;;  %1361 = vst [vmem:[%s2045_s1 + $0x18] sm:$0x3] %v921_v45  ;;  %v927_v59 = vld [vmem:[#allocation0 + $0x68] sm:$0xf]  ;;  %v1096_v1 = vpack.c.bf16 %v1476_v26, %v1095_v60 }
  0xf2   :  { %1369 = vst [vmem:[%s2045_s1 + $0x28] sm:$0x3] %v977_v46  ;;  %1377 = vst [vmem:[%s2045_s1 + $0x38] sm:$0x3] %v1033_v50  ;;  %v1151_v61 = vld [vmem:[#allocation0 + $0x168] sm:$0xf]  ;;  %v928_v0 = vpack.c.bf16 %v1476_v26, %v927_v59 }
  0xf3   :  { %1401 = vst [vmem:[%s2045_s1 + $0x68] sm:$0x3] %v1201_v51  ;;  %1409 = vst [vmem:[%s2045_s1 + $0x78] sm:$0x3] %v1257_v52  ;;  %v1152_v2 = vpack.c.bf16 %v1476_v26, %v1151_v61  ;;  %v871_v3 = vld [vmem:[#allocation0 + $0x28] sm:$0xf] }
  0xf4   :  { %1385 = vst [vmem:[%s2045_s1 + $0x48] sm:$0x3] %v1089_v55  ;;  %1393 = vst [vmem:[%s2045_s1 + $0x58] sm:$0x3] %v1145_v56  ;;  %v983_v4 = vld [vmem:[#allocation0 + $0xa8] sm:$0xf]  ;;  %v872_v8 = vpack.c.bf16 %v1476_v26, %v871_v3 }
  0xf5   :  { %676 = vst.msk [vmem:[#allocation0 + $0x31] sm:$0x1] %vm66_vm1, %v673_v57   ;;  %678 = vst.msk [vmem:[#allocation0 + $0x130] sm:$0x2] %vm66_vm1, %v673_v57   ;;  %v1039_v5 = vld [vmem:[#allocation0 + $0xe8] sm:$0xf]  ;;  %v984_v9 = vpack.c.bf16 %v1476_v26, %v983_v4 }
  0xf6   :  { %680 = vst.msk [vmem:[#allocation0 + $0x6f] sm:$0x4] %vm66_vm1, %v673_v57   ;;  %682 = vst.msk [vmem:[#allocation0 + $0x16e] sm:$0x8] %vm66_vm1, %v673_v57   ;;  %v1207_v6 = vld [vmem:[#allocation0 + $0x1a8] sm:$0xf]  ;;  %v1040_v10 = vpack.c.bf16 %v1476_v26, %v1039_v5 }
  0xf7   :  { %684 = vst.msk [vmem:[#allocation0 + $0xad] sm:$0x10] %vm66_vm1, %v673_v57   ;;  %686 = vst.msk [vmem:[#allocation0 + $0x1ac] sm:$0x20] %vm66_vm1, %v673_v57   ;;  %v1263_v7 = vld [vmem:[#allocation0 + $0x1e8] sm:$0xf]  ;;  %v1208_v11 = vpack.c.bf16 %v1476_v26, %v1207_v6 }
  0xf8   :  { %688 = vst.msk [vmem:[#allocation0 + $0xeb] sm:$0x40] %vm66_vm1, %v673_v57   ;;  %690 = vst.msk [vmem:[#allocation0 + $0x1ea] sm:$0x80] %vm66_vm1, %v673_v57   ;;  %v1264_v12 = vpack.c.bf16 %v1476_v26, %v1263_v7 }
  0xf9   :  { %700 = vst.msk [vmem:[#allocation0 + $0x32] sm:$0x1] %vm66_vm1, %v697_v58   ;;  %702 = vst.msk [vmem:[#allocation0 + $0x131] sm:$0x2] %vm66_vm1, %v697_v58  }
  0xfa   :  { %704 = vst.msk [vmem:[#allocation0 + $0x70] sm:$0x4] %vm66_vm1, %v697_v58   ;;  %706 = vst.msk [vmem:[#allocation0 + $0x16f] sm:$0x8] %vm66_vm1, %v697_v58  }
  0xfb   :  { %708 = vst.msk [vmem:[#allocation0 + $0xae] sm:$0x10] %vm66_vm1, %v697_v58   ;;  %710 = vst.msk [vmem:[#allocation0 + $0x1ad] sm:$0x20] %vm66_vm1, %v697_v58  }
  0xfc   :  { %712 = vst.msk [vmem:[#allocation0 + $0xec] sm:$0x40] %vm66_vm1, %v697_v58   ;;  %714 = vst.msk [vmem:[#allocation0 + $0x1eb] sm:$0x80] %vm66_vm1, %v697_v58  }
  0xfd   :  { %724 = vst.msk [vmem:[#allocation0 + $0x33] sm:$0x1] %vm66_vm1, %v721_v62   ;;  %726 = vst.msk [vmem:[#allocation0 + $0x132] sm:$0x2] %vm66_vm1, %v721_v62  }
  0xfe   :  { %728 = vst.msk [vmem:[#allocation0 + $0x71] sm:$0x4] %vm66_vm1, %v721_v62   ;;  %730 = vst.msk [vmem:[#allocation0 + $0x170] sm:$0x8] %vm66_vm1, %v721_v62  }
  0xff   :  { %732 = vst.msk [vmem:[#allocation0 + $0xaf] sm:$0x10] %vm66_vm1, %v721_v62   ;;  %734 = vst.msk [vmem:[#allocation0 + $0x1ae] sm:$0x20] %vm66_vm1, %v721_v62  }
 0x100   :  { %736 = vst.msk [vmem:[#allocation0 + $0xed] sm:$0x40] %vm66_vm1, %v721_v62   ;;  %738 = vst.msk [vmem:[#allocation0 + $0x1ec] sm:$0x80] %vm66_vm1, %v721_v62  }
 0x101   :  { %748 = vst.msk [vmem:[#allocation0 + $0x38] sm:$0x1] %vm66_vm1, %v745_v63   ;;  %750 = vst.msk [vmem:[#allocation0 + $0x137] sm:$0x2] %vm66_vm1, %v745_v63  }
 0x102   :  { %752 = vst.msk [vmem:[#allocation0 + $0x76] sm:$0x4] %vm66_vm1, %v745_v63   ;;  %754 = vst.msk [vmem:[#allocation0 + $0x175] sm:$0x8] %vm66_vm1, %v745_v63  }
 0x103   :  { %756 = vst.msk [vmem:[#allocation0 + $0xb4] sm:$0x10] %vm66_vm1, %v745_v63   ;;  %758 = vst.msk [vmem:[#allocation0 + $0x1b3] sm:$0x20] %vm66_vm1, %v745_v63  }
 0x104   :  { %760 = vst.msk [vmem:[#allocation0 + $0xf2] sm:$0x40] %vm66_vm1, %v745_v63   ;;  %762 = vst.msk [vmem:[#allocation0 + $0x1f1] sm:$0x80] %vm66_vm1, %v745_v63   ;;  %v878_v15 = vld [vmem:[#allocation0 + $0x30] sm:$0xf] }
 0x105   :  { %1362 = vst [vmem:[%s2045_s1 + $0x1a] sm:$0x3] %v928_v0  ;;  %1386 = vst [vmem:[%s2045_s1 + $0x4a] sm:$0x3] %v1096_v1  ;;  %v934_v16 = vld [vmem:[#allocation0 + $0x70] sm:$0xf]  ;;  %v879_v19 = vpack.c.bf16 %v1476_v26, %v878_v15 }
 0x106   :  { %1394 = vst [vmem:[%s2045_s1 + $0x5a] sm:$0x3] %v1152_v2  ;;  %1354 = vst [vmem:[%s2045_s1 + $0xa] sm:$0x3] %v872_v8  ;;  %v935_v20 = vpack.c.bf16 %v1476_v26, %v934_v16  ;;  %v990_v22 = vld [vmem:[#allocation0 + $0xb0] sm:$0xf] }
 0x107   :  { %1370 = vst [vmem:[%s2045_s1 + $0x2a] sm:$0x3] %v984_v9  ;;  %1378 = vst [vmem:[%s2045_s1 + $0x3a] sm:$0x3] %v1040_v10  ;;  %v1046_v17 = vld [vmem:[#allocation0 + $0xf0] sm:$0xf]  ;;  %v991_v28 = vpack.c.bf16 %v1476_v26, %v990_v22 }
 0x108   :  { %1402 = vst [vmem:[%s2045_s1 + $0x6a] sm:$0x3] %v1208_v11  ;;  %1410 = vst [vmem:[%s2045_s1 + $0x7a] sm:$0x3] %v1264_v12  ;;  %v1047_v21 = vpack.c.bf16 %v1476_v26, %v1046_v17  ;;  %v1102_v23 = vld [vmem:[#allocation0 + $0x130] sm:$0xf] }
 0x109   :  { %772 = vst.msk [vmem:[#allocation0 + $0x39] sm:$0x1] %vm66_vm1, %v769_v13   ;;  %774 = vst.msk [vmem:[#allocation0 + $0x138] sm:$0x2] %vm66_vm1, %v769_v13   ;;  %v1158_v24 = vld [vmem:[#allocation0 + $0x170] sm:$0xf]  ;;  %v1103_v29 = vpack.c.bf16 %v1476_v26, %v1102_v23 }
 0x10a   :  { %776 = vst.msk [vmem:[#allocation0 + $0x77] sm:$0x4] %vm66_vm1, %v769_v13   ;;  %778 = vst.msk [vmem:[#allocation0 + $0x176] sm:$0x8] %vm66_vm1, %v769_v13   ;;  %v1214_v25 = vld [vmem:[#allocation0 + $0x1b0] sm:$0xf]  ;;  %v1159_v30 = vpack.c.bf16 %v1476_v26, %v1158_v24 }
 0x10b   :  { %780 = vst.msk [vmem:[#allocation0 + $0xb5] sm:$0x10] %vm66_vm1, %v769_v13   ;;  %782 = vst.msk [vmem:[#allocation0 + $0x1b4] sm:$0x20] %vm66_vm1, %v769_v13   ;;  %v1270_v27 = vld [vmem:[#allocation0 + $0x1f0] sm:$0xf]  ;;  %v1215_v31 = vpack.c.bf16 %v1476_v26, %v1214_v25 }
 0x10c   :  { %784 = vst.msk [vmem:[#allocation0 + $0xf3] sm:$0x40] %vm66_vm1, %v769_v13   ;;  %786 = vst.msk [vmem:[#allocation0 + $0x1f2] sm:$0x80] %vm66_vm1, %v769_v13   ;;  %v1271_v32 = vpack.c.bf16 %v1476_v26, %v1270_v27 }
 0x10d   :  { %796 = vst.msk [vmem:[#allocation0 + $0x3a] sm:$0x1] %vm66_vm1, %v793_v14   ;;  %798 = vst.msk [vmem:[#allocation0 + $0x139] sm:$0x2] %vm66_vm1, %v793_v14  }
 0x10e   :  { %800 = vst.msk [vmem:[#allocation0 + $0x78] sm:$0x4] %vm66_vm1, %v793_v14   ;;  %802 = vst.msk [vmem:[#allocation0 + $0x177] sm:$0x8] %vm66_vm1, %v793_v14  }
 0x10f   :  { %804 = vst.msk [vmem:[#allocation0 + $0xb6] sm:$0x10] %vm66_vm1, %v793_v14   ;;  %806 = vst.msk [vmem:[#allocation0 + $0x1b5] sm:$0x20] %vm66_vm1, %v793_v14  }
 0x110   :  { %808 = vst.msk [vmem:[#allocation0 + $0xf4] sm:$0x40] %vm66_vm1, %v793_v14   ;;  %810 = vst.msk [vmem:[#allocation0 + $0x1f3] sm:$0x80] %vm66_vm1, %v793_v14  }
 0x111   :  { %820 = vst.msk [vmem:[#allocation0 + $0x3b] sm:$0x1] %vm66_vm1, %v817_v18   ;;  %822 = vst.msk [vmem:[#allocation0 + $0x13a] sm:$0x2] %vm66_vm1, %v817_v18  }
 0x112   :  { %824 = vst.msk [vmem:[#allocation0 + $0x79] sm:$0x4] %vm66_vm1, %v817_v18   ;;  %826 = vst.msk [vmem:[#allocation0 + $0x178] sm:$0x8] %vm66_vm1, %v817_v18  }
 0x113   :  { %828 = vst.msk [vmem:[#allocation0 + $0xb7] sm:$0x10] %vm66_vm1, %v817_v18   ;;  %830 = vst.msk [vmem:[#allocation0 + $0x1b6] sm:$0x20] %vm66_vm1, %v817_v18  }
 0x114   :  { %832 = vst.msk [vmem:[#allocation0 + $0xf5] sm:$0x40] %vm66_vm1, %v817_v18   ;;  %834 = vst.msk [vmem:[#allocation0 + $0x1f4] sm:$0x80] %vm66_vm1, %v817_v18  }
 0x115   :  { %1355 = vst [vmem:[%s2045_s1 + $0xc] sm:$0x3] %v879_v19  ;;  %1363 = vst [vmem:[%s2045_s1 + $0x1c] sm:$0x3] %v935_v20 }
 0x116   :  { %1379 = vst [vmem:[%s2045_s1 + $0x3c] sm:$0x3] %v1047_v21  ;;  %1371 = vst [vmem:[%s2045_s1 + $0x2c] sm:$0x3] %v991_v28 }
 0x117   :  { %1387 = vst [vmem:[%s2045_s1 + $0x4c] sm:$0x3] %v1103_v29  ;;  %1395 = vst [vmem:[%s2045_s1 + $0x5c] sm:$0x3] %v1159_v30 }
 0x118   :  { %1403 = vst [vmem:[%s2045_s1 + $0x6c] sm:$0x3] %v1215_v31  ;;  %1411 = vst [vmem:[%s2045_s1 + $0x7c] sm:$0x3] %v1271_v32  ;;  %v885_v33 = vld [vmem:[#allocation0 + $0x38] sm:$0xf] }
 0x119   :  { %v941_v34 = vld [vmem:[#allocation0 + $0x78] sm:$0xf]  ;;  %v886_v36 = vpack.c.bf16 %v1476_v26, %v885_v33 }
 0x11a   :  { %v997_v35 = vld [vmem:[#allocation0 + $0xb8] sm:$0xf]  ;;  %v942_v37 = vpack.c.bf16 %v1476_v26, %v941_v34 }
 0x11b   :  { %v998_v38 = vpack.c.bf16 %v1476_v26, %v997_v35  ;;  %v1053_v39 = vld [vmem:[#allocation0 + $0xf8] sm:$0xf]  ;;  %1356 = vst [vmem:[%s2045_s1 + $0xe] sm:$0x3] %v886_v36 }
 0x11c   :  { %v1221_v40 = vld [vmem:[#allocation0 + $0x1b8] sm:$0xf]  ;;  %v1054_v42 = vpack.c.bf16 %v1476_v26, %v1053_v39  ;;  %1364 = vst [vmem:[%s2045_s1 + $0x1e] sm:$0x3] %v942_v37 }
 0x11d   :  { %v1277_v41 = vld [vmem:[#allocation0 + $0x1f8] sm:$0xf]  ;;  %v1222_v43 = vpack.c.bf16 %v1476_v26, %v1221_v40  ;;  %1372 = vst [vmem:[%s2045_s1 + $0x2e] sm:$0x3] %v998_v38 }
 0x11e   :  { %v1278_v44 = vpack.c.bf16 %v1476_v26, %v1277_v41  ;;  %v1109_v45 = vld [vmem:[#allocation0 + $0x138] sm:$0xf]  ;;  %1380 = vst [vmem:[%s2045_s1 + $0x3e] sm:$0x3] %v1054_v42 }
 0x11f   :  { %v1165_v46 = vld [vmem:[#allocation0 + $0x178] sm:$0xf]  ;;  %v1110_v47 = vpack.c.bf16 %v1476_v26, %v1109_v45  ;;  %1404 = vst [vmem:[%s2045_s1 + $0x6e] sm:$0x3] %v1222_v43 }
 0x120   :  { %v1166_v26 = vpack.c.bf16 %v1476_v26, %v1165_v46  ;;  %1412 = vst [vmem:[%s2045_s1 + $0x7e] sm:$0x3] %v1278_v44 }
 0x121   :  { %1388 = vst [vmem:[%s2045_s1 + $0x4e] sm:$0x3] %v1110_v47 }
 0x122   :  { %1396 = vst [vmem:[%s2045_s1 + $0x5e] sm:$0x3] %v1166_v26 }

// kernel: _lambda_.4
= control target key start
LH: loop header
LB: loop body
LE: loop exit
PB: predicated region body
PF: predicated region fallthrough
CT: control target
= control target key end

     0   :  { %8 = vsyncpa [#allocation3], 0  ;;  %s327_s12 = smov [#allocation2]   ;;  %s418_s0 = inlined_call_operand.vmem [shape: bf16[1,8,64], index: 0, kind: input, shape index: {}]   ;;  %s419_s1 = inlined_call_operand.vmem [shape: bf16[1,64,512], index: 1, kind: input, shape index: {}]   ;;  %s420_s2 = inlined_call_operand.hbm [shape: f32[1,512], index: 2, kind: input, shape index: {}]   ;;  %s421_s3 = inlined_call_operand.vmem [shape: bf16[1,8,512], index: 3, kind: output, shape index: {}]  }
   0x1   :  { %s19_s13 = sshll.u32 %s327_s12, 4  ;;  %s303_s16 = scalar_lea.hbm %s420_s2, 64  ;;  %s20_s13 = int_to_ptr.vmem [resolvable:$true] %s19_s13 }
   0x2   :  { %p304_p0 = scmp.ne.s32.totalorder %s420_s2, %s303_s16  ;;  %p307_p1 = scmp.lt.u32.totalorder %s303_s16, %s420_s2 }
   0x4   :  { %p309_p2 = pnand %p307_p1, %p304_p0 }
   0x6   :  { %312 = shalt.err (!%p309_p2)
}
   0x7   :  { %s313_s21 = scalar_lea.vmem %s20_s13, 64  ;;  %p318_p4 = scmp.lt.s32.totalorder %s20_s13, %s20_s13 }
   0x8   :  { %p314_p3 = scmp.ne.s32.totalorder %s20_s13, %s313_s21  ;;  %p319_p5 = scmp.lt.s32.totalorder %s313_s21, %s313_s21 }
   0xa   :  { %p320_p6 = por %p319_p5, %p318_p4 }
   0xc   :  { %p321_p7 = pnand %p320_p6, %p314_p3 }
   0xe   :  { %324 = shalt.err (!%p321_p7)
}
   0xf   :  { %22 = dma.hbm_to_vmem [thread:$0]  %s420_s2, 64, %s20_s13, [#allocation3]  }
  0x10   :  { %325 = dma.done.wait [#allocation3], 64  }
  0x11   :  { %326 = vsyncadd [#allocation3], 4294967232  ;;  %v328_v0 = vmov 0   ;;  %v279_v1 = vld [vmem:[%s419_s1 + $0x4] ss:$16 sps:$4 sm:$0xff]   ;;  %vm146_vm0 = vcmask 523264   ;;  %v46_v18 = vlaneseq }
  0x12   :  { %182 = vmatprep.mubr.bf16.mxu0 %v328_v0  ;;  %223 = vmatprep.mubr.bf16.mxu1 %v328_v0  ;;  %v281_v2 = vld [vmem:[%s419_s1 + $0xc] ss:$16 sps:$4 sm:$0xff]   ;;  %v283_v3 = vld [vmem:[%s419_s1] ss:$16 sps:$4 sm:$0xff]   ;;  %v284_v4 = vld [vmem:[%s419_s1 + $0x8] ss:$16 sps:$4 sm:$0xff]  }
  0x13   :  { %150 = vmatprep.subr.bf16.mxu0 %v279_v1  ;;  %191 = vmatprep.subr.bf16.mxu1 %v281_v2  ;;  %v285_v5 = vld [vmem:[%s419_s1 + $0x24] ss:$16 sps:$4 sm:$0xff]   ;;  %v287_v6 = vld [vmem:[%s419_s1 + $0x2c] ss:$16 sps:$4 sm:$0xff]   ;;  %v289_v7 = vld [vmem:[%s419_s1 + $0x20] ss:$16 sps:$4 sm:$0xff]  }
  0x14   :  { %151 = vmatpush1.bf16.msra.mxu0 %v283_v3  ;;  %192 = vmatpush1.bf16.msra.mxu1 %v284_v4  ;;  %v290_v8 = vld [vmem:[%s419_s1 + $0x28] ss:$16 sps:$4 sm:$0xff]   ;;  %v291_v9 = vld [vmem:[%s419_s1 + $0x44] ss:$16 sps:$4 sm:$0xff]   ;;  %v293_v10 = vld [vmem:[%s419_s1 + $0x4c] ss:$16 sps:$4 sm:$0xff]  }
  0x15   :  { %152 = vmatprep.subr.bf16.mxu0 %v285_v5  ;;  %193 = vmatprep.subr.bf16.mxu1 %v287_v6  ;;  %v295_v11 = vld [vmem:[%s419_s1 + $0x40] ss:$16 sps:$4 sm:$0xff]   ;;  %v296_v12 = vld [vmem:[%s419_s1 + $0x48] ss:$16 sps:$4 sm:$0xff]   ;;  %v297_v13 = vld [vmem:[%s419_s1 + $0x64] ss:$16 sps:$4 sm:$0xff]  }
  0x16   :  { %v299_v14 = vld [vmem:[%s419_s1 + $0x6c] ss:$16 sps:$4 sm:$0xff]   ;;  %v301_v15 = vld [vmem:[%s419_s1 + $0x60] ss:$16 sps:$4 sm:$0xff]   ;;  %v302_v16 = vld [vmem:[%s419_s1 + $0x68] ss:$16 sps:$4 sm:$0xff]  }
  0x17   :  { %v27_v17 = vld [vmem:[%s418_s0] sm:$0xf]  ;;  %v47_v19 = vshrl.u32 %v46_v18, 7 }
  0x18   :  { %153 = vmatpush1.bf16.msra.mxu0 %v289_v7  ;;  %194 = vmatpush1.bf16.msra.mxu1 %v290_v8  ;;  %v44_v22 = vld [vmem:[#allocation2] sm:$0xf] }
  0x19   :  { %154 = vmatprep.subr.bf16.mxu0 %v291_v9  ;;  %195 = vmatprep.subr.bf16.mxu1 %v293_v10  ;;  %v48_v20 = vsub.s32 0, %v47_v19  ;;  %v56_v21 = vsub.s32 2, %v47_v19  ;;  %v52_v23 = vsub.s32 1, %v47_v19  ;;  %v60_v24 = vsub.s32 3, %v47_v19 }
  0x1b   :  { %v49_v25 = vrot.slane %v44_v22, %v48_v20  ;;  %v57_v26 = vrot.slane %v44_v22, %v56_v21  ;;  %v53_v27 = vrot.slane %v44_v22, %v52_v23  ;;  %v61_v28 = vrot.slane %v44_v22, %v60_v24 }
  0x1c   :  { %155 = vmatpush1.bf16.msra.mxu0 %v295_v11  ;;  %196 = vmatpush1.bf16.msra.mxu1 %v296_v12 }
  0x1d   :  { %156 = vmatprep.subr.bf16.mxu0 %v297_v13  ;;  %197 = vmatprep.subr.bf16.mxu1 %v299_v14 }
  0x20   :  { %157 = vmatpush1.bf16.msra.mxu0 %v301_v15  ;;  %198 = vmatpush1.bf16.msra.mxu1 %v302_v16 }
  0x23   :  { %271 = vmatmul.mubr.msk.bf16.vlgmr.msra.gmra.mrb[0].mxu0 %vm146_vm0, %v27_v17  ;;  %272 = vmatmul.mubr.msk.bf16.vlgmr.msra.gmra.mrb[0].mxu1 %vm146_vm0, %v27_v17 }
  0xf6   :  { %v184_v29 = vpop.f32.mrb[0].mxu0  ;;  %v225_v30 = vpop.f32.mrb[0].mxu1 }
  0xf7   :  { %v185_v31 = vadd.f32 %v184_v29, %v49_v25  ;;  %v226_v32 = vadd.f32 %v225_v30, %v57_v26  ;;  %v186_v33 = vpop.f32.mrb[1].mxu0  ;;  %v227_v34 = vpop.f32.mrb[1].mxu1 }
  0xf8   :  { %v187_v35 = vadd.f32 %v186_v33, %v53_v27  ;;  %v228_v36 = vadd.f32 %v227_v34, %v61_v28  ;;  %v188_v37 = vpop.f32.mrb[2].mxu0  ;;  %v229_v38 = vpop.f32.mrb[2].mxu1 }
  0xf9   :  { %v189_v39 = vpop.f32.mrb[3].mxu0  ;;  %v230_v40 = vpop.f32.mrb[3].mxu1 }
  0xfa   :  { %v275_v41 = vpack.c.bf16 %v187_v35, %v185_v31  ;;  %v276_v42 = vpack.c.bf16 %v228_v36, %v226_v32 }
  0xfc   :  { %248 = vst [vmem:[%s421_s3] sm:$0xff] %v275_v41  ;;  %249 = vst [vmem:[%s421_s3 + $0x8] sm:$0xff] %v276_v42 }
  0xfd   :  { %254 = vsyncpa [#allocation3], 1 }

// kernel: _lambda_.5
= control target key start
LH: loop header
LB: loop body
LE: loop exit
PB: predicated region body
PF: predicated region fallthrough
CT: control target
= control target key end

     0   :  { %s511_s12 = smov 0   ;;  %s545_s0 = inlined_call_operand.vmem [shape: bf16[4,16,128], index: 0, kind: input, shape index: {}]   ;;  %s546_s1 = inlined_call_operand.vmem [shape: bf16[4,128,32], index: 1, kind: input, shape index: {}]   ;;  %s547_s2 = inlined_call_operand.vmem [shape: f32[16,1], index: 2, kind: input, shape index: {}]   ;;  %s548_s3 = inlined_call_operand.vmem [shape: bf16[4,16,32], index: 3, kind: output, shape index: {}]  }
   0x1 LB: > { %s401_s13 = sadd.s32 4294967295, %s486_s12   ;;  %p405_p0 = scmp.ge.s32.totalorder %s486_s12, 1  ;;  %s486_s12 = sphi %s511_s12, %s13_s12  }
   0x2   : > { %p147_p1 = scmp.lt.s32.totalorder %s486_s12, 5 }
   0x4   : > { %p148_p2 = pnand %p405_p0, %p147_p1 }
   0x5   : > { %p176_p3 = scmp.lt.s32.totalorder (!%p148_p2), %s401_s13, 3  ;;  %v210_v0 = vld [vmem:[%s547_s2] sm:$0xff] (!%p148_p2)  ;;  %v488_v1 = vmov (!%p148_p2), 0.0   ;;  %vm489_vm0 = vmmov (!%p148_p2), 0   ;;  %v490_v2 = vmov (!%p148_p2), 0   ;;  %v211_v3 = vld [vmem:[%s547_s2 + $0x8] sm:$0xff] (!%p148_p2) }
   0x6   : > { %151 = sbr.rel (%p148_p2) target bundleno = 270 (0x10e), region = 32  ;;  %439 = vmatprep.subr.bf16.mxu0 (!%p148_p2), %v488_v1  ;;  %455 = vmatprep.mubr.msk.bf16.mxu0 (!%p148_p2), %vm489_vm0, %v488_v1  ;;  %vm331_vm2 = vcmask (!%p148_p2), 257024  }
   0x7   : > { %470 = vset.pattern.permute.xlu0 (!%p148_p2), %v490_v2 }
   0x8   : > { %214 = vperm.xlu0 (!%p148_p2), %470, %v210_v0  }
   0xc   : > { %219 = vperm.xlu0 (!%p148_p2), %470, %v211_v3  }
   0xd   : > { %s550_s13 = smov (!%p176_p3, %s401_s13), 3 }
   0xe   : > { %s426_s16 = sshll.u32 %s550_s13, 6  ;;  %s425_s22 = sshll.u32 %s550_s13, 3 }
   0xf   : > { %s185_s21 = scalar_lea.vmem %s546_s1, %s426_s16  ;;  %s180_s25 = scalar_lea.vmem %s545_s0, %s425_s22 }
  0x10   : > { %v471_v4 = vld [vmem:[%s185_s21] sm:$0xff]   ;;  %v472_v5 = vld [vmem:[%s185_s21 + $0x8] sm:$0xff]   ;;  %v473_v6 = vld [vmem:[%s185_s21 + $0x10] sm:$0xff]   ;;  %s190_s28 = scalar_lea.vmem %s548_s3, %s425_s22 }
  0x11   : > { %440 = vmatpush3.bf16.msra.mxu0 %v471_v4  ;;  %v474_v7 = vld [vmem:[%s185_s21 + $0x18] sm:$0xff]   ;;  %v475_v8 = vld [vmem:[%s185_s21 + $0x20] sm:$0xff]   ;;  %v476_v9 = vld [vmem:[%s185_s21 + $0x28] sm:$0xff]  }
  0x12   : > { %441 = vmatprep.subr.bf16.mxu0 %v488_v1  ;;  %v477_v10 = vld [vmem:[%s185_s21 + $0x30] sm:$0xff]   ;;  %v478_v11 = vld [vmem:[%s185_s21 + $0x38] sm:$0xff]   ;;  %v479_v12 = vld [vmem:[%s180_s25] sm:$0xff]  }
  0x15   : > { %442 = vmatpush3.bf16.msra.mxu0 %v472_v5 }
  0x16   : > { %443 = vmatprep.subr.bf16.mxu0 %v488_v1 }
  0x19   : > { %444 = vmatpush3.bf16.msra.mxu0 %v473_v6 }
  0x1a   : > { %445 = vmatprep.subr.bf16.mxu0 %v488_v1 }
  0x1d   : > { %446 = vmatpush3.bf16.msra.mxu0 %v474_v7 }
  0x1e   : > { %447 = vmatprep.subr.bf16.mxu0 %v488_v1 }
  0x21   : > { %448 = vmatpush3.bf16.msra.mxu0 %v475_v8 }
  0x22   : > { %449 = vmatprep.subr.bf16.mxu0 %v488_v1 }
  0x25   : > { %450 = vmatpush3.bf16.msra.mxu0 %v476_v9 }
  0x26   : > { %451 = vmatprep.subr.bf16.mxu0 %v488_v1 }
  0x29   : > { %452 = vmatpush3.bf16.msra.mxu0 %v477_v10 }
  0x2a   : > { %453 = vmatprep.subr.bf16.mxu0 %v488_v1 }
  0x2d   : > { %454 = vmatpush3.bf16.msra.mxu0 %v478_v11 }
  0x30   : > { %456 = vmatmul.mubr.bf16.vlgmr.msra.gmra.mrb[0].mxu0 %v479_v12 }
  0x87   : > { %v215_v13 = vpop.permute.xlu0 %214 }
  0x8b   : > { %v220_v17 = vpop.permute.xlu0 %219 }
 0x103   : > { %v310_v14 = vpop.f32.mrb[0].mxu0 }
 0x104   : > { %v311_v15 = vadd.f32 %v310_v14, %v215_v13  ;;  %v457_v16 = vpop.f32.mrb[1].mxu0 }
 0x105   : > { %v313_v18 = vpop.f32.mrb[2].mxu0 }
 0x106   : > { %vm317_vm1 = vcmp.ge.f32.partialorder %v311_v15, 0.0  ;;  %v319_v19 = vmul.f32 0.2, %v311_v15  ;;  %v314_v20 = vadd.f32 %v313_v18, %v220_v17  ;;  %v458_v21 = vpop.f32.mrb[3].mxu0 }
 0x108   : > { %v321_v22 = vsel %vm317_vm1, %v311_v15, %v319_v19  ;;  %vm318_vm3 = vcmp.ge.f32.partialorder %v314_v20, 0.0  ;;  %v320_v23 = vmul.f32 0.2, %v314_v20 }
 0x109   : > { %v428_v24 = vpack.c.bf16 %v321_v22, %v321_v22 }
 0x10a   : > { %v322_v25 = vsel %vm318_vm3, %v314_v20, %v320_v23 }
 0x10b   : > { %332 = vst.msk [vmem:[%s190_s28] sm:$0xf] %vm331_vm2, %v428_v24  ;;  %v429_v26 = vpack.c.bf16 %v322_v25, %v322_v25 }
 0x10d   : > { %333 = vst.msk [vmem:[%s190_s28 + $0x4] sm:$0xf] %vm331_vm2, %v429_v26 }
 0x10e PF: > { %s13_s12 = sadd.s32 1, %s486_s12  }
 0x10f   : > { %p10_p4 = scmp.ge.s32.totalorder %s13_s12, 6  }
 0x111   :  { %12 = sbr.rel (!%p10_p4) target bundleno = 1 (0x1), region = 65 }

// kernel: _lambda_.6
= control target key start
LH: loop header
LB: loop body
LE: loop exit
PB: predicated region body
PF: predicated region fallthrough
CT: control target
= control target key end

     0   :  { %s421_s12 = smov 0   ;;  %s448_s0 = inlined_call_operand.vmem [shape: bf16[4,8,64], index: 0, kind: input, shape index: {}]   ;;  %s449_s1 = inlined_call_operand.vmem [shape: bf16[4,64,128], index: 1, kind: input, shape index: {}]   ;;  %s450_s2 = inlined_call_operand.vmem [shape: f32[8,1], index: 2, kind: input, shape index: {}]   ;;  %s451_s3 = inlined_call_operand.vmem [shape: bf16[4,8,128], index: 3, kind: output, shape index: {}]  }
   0x1 LB: > { %s340_s13 = sadd.s32 4294967295, %s396_s12   ;;  %p344_p0 = scmp.ge.s32.totalorder %s396_s12, 1  ;;  %s396_s12 = sphi %s421_s12, %s13_s12  }
   0x2   : > { %p146_p1 = scmp.lt.s32.totalorder %s396_s12, 5 }
   0x4   : > { %p147_p2 = pnand %p344_p0, %p146_p1 }
   0x5   : > { %p173_p3 = scmp.lt.s32.totalorder (!%p147_p2), %s340_s13, 3  ;;  %v196_v0 = vld [vmem:[%s450_s2] sm:$0xff] (!%p147_p2)  ;;  %v398_v1 = vmov (!%p147_p2), 0.0   ;;  %vm399_vm0 = vmmov (!%p147_p2), 0   ;;  %v400_v2 = vmov (!%p147_p2), 0   ;;  %vm226_vm1 = vcmask (!%p147_p2), 523264  }
   0x6   : > { %150 = sbr.rel (%p147_p2) target bundleno = 252 (0xfc), region = 32  ;;  %362 = vmatprep.subr.bf16.mxu0 (!%p147_p2), %v398_v1  ;;  %370 = vmatprep.mubr.msk.bf16.mxu0 (!%p147_p2), %vm399_vm0, %v398_v1 }
   0x7   : > { %385 = vset.pattern.permute.xlu0 (!%p147_p2), %v400_v2 }
   0x8   : > { %199 = vperm.xlu0 (!%p147_p2), %385, %v196_v0  }
   0xd   : > { %s453_s13 = smov (!%p173_p3, %s340_s13), 3 }
   0xe   : > { %s356_s16 = sshll.u32 %s453_s13, 5  ;;  %s345_s20 = sshll.u32 %s453_s13, 2 }
   0xf   : > { %s181_s19 = scalar_lea.vmem %s449_s1, %s356_s16  ;;  %s176_s23 = scalar_lea.vmem %s448_s0, %s345_s20 }
  0x10   : > { %v386_v3 = vld [vmem:[%s181_s19] sm:$0xff]   ;;  %v387_v4 = vld [vmem:[%s181_s19 + $0x8] sm:$0xff]   ;;  %v388_v5 = vld [vmem:[%s181_s19 + $0x10] sm:$0xff]   ;;  %s185_s26 = scalar_lea.vmem %s451_s3, %s345_s20 }
  0x11   : > { %363 = vmatpush3.bf16.msra.mxu0 %v386_v3  ;;  %v389_v6 = vld [vmem:[%s181_s19 + $0x18] sm:$0xff]   ;;  %v187_v7 = vld [vmem:[%s176_s23] sm:$0xf] }
  0x12   : > { %364 = vmatprep.subr.bf16.mxu0 %v398_v1 }
  0x15   : > { %365 = vmatpush3.bf16.msra.mxu0 %v387_v4 }
  0x16   : > { %366 = vmatprep.subr.bf16.mxu0 %v398_v1 }
  0x19   : > { %367 = vmatpush3.bf16.msra.mxu0 %v388_v5 }
  0x1a   : > { %368 = vmatprep.subr.bf16.mxu0 %v398_v1 }
  0x1d   : > { %369 = vmatpush3.bf16.msra.mxu0 %v389_v6 }
  0x20   : > { %371 = vmatmul.mubr.msk.bf16.vlgmr.msra.gmra.mrb[0].mxu0 %vm226_vm1, %v187_v7 }
  0x87   : > { %v200_v8 = vpop.permute.xlu0 %199 }
  0xf3   : > { %v264_v9 = vpop.f32.mrb[0].mxu0 }
  0xf4   : > { %v265_v10 = vadd.f32 %v264_v9, %v200_v8  ;;  %v372_v11 = vpop.f32.mrb[1].mxu0 }
  0xf5   : > { %v267_v12 = vpop.f32.mrb[2].mxu0 }
  0xf6   : > { %vm270_vm2 = vcmp.ge.f32.partialorder %v265_v10, 0.0  ;;  %v271_v13 = vmul.f32 0.2, %v265_v10  ;;  %v373_v14 = vpop.f32.mrb[3].mxu0 }
  0xf8   : > { %v272_v15 = vsel %vm270_vm2, %v265_v10, %v271_v13 }
  0xf9   : > { %v273_v16 = vpack.c.bf16 %v272_v15, %v272_v15 }
  0xfb   : > { %274 = vst [vmem:[%s185_s26] sm:$0xf] %v273_v16 }
  0xfc PF: > { %s13_s12 = sadd.s32 1, %s396_s12  }
  0xfd   : > { %p10_p4 = scmp.ge.s32.totalorder %s13_s12, 6  }
  0xff   :  { %12 = sbr.rel (!%p10_p4) target bundleno = 1 (0x1), region = 65 }

// kernel: _lambda_.7
= control target key start
LH: loop header
LB: loop body
LE: loop exit
PB: predicated region body
PF: predicated region fallthrough
CT: control target
= control target key end

     0   :  { %s488_s12 = smov 0   ;;  %s516_s0 = inlined_call_operand.vmem [shape: bf16[4,8,32], index: 0, kind: input, shape index: {}]   ;;  %s517_s1 = inlined_call_operand.vmem [shape: bf16[4,32,512], index: 1, kind: input, shape index: {}]   ;;  %s518_s2 = inlined_call_operand.vmem [shape: f32[8,1], index: 2, kind: input, shape index: {}]   ;;  %s519_s3 = inlined_call_operand.vmem [shape: f32[4,8,512], index: 3, kind: output, shape index: {}]  }
   0x1 LB: > { %s413_s13 = sadd.s32 4294967295, %s465_s12   ;;  %p417_p0 = scmp.ge.s32.totalorder %s465_s12, 1  ;;  %s465_s12 = sphi %s488_s12, %s13_s12  }
   0x2   : > { %p146_p1 = scmp.lt.s32.totalorder %s465_s12, 5 }
   0x4   : > { %p147_p2 = pnand %p417_p0, %p146_p1 }
   0x5   : > { %p174_p3 = scmp.lt.s32.totalorder (!%p147_p2), %s413_s13, 3  ;;  %v198_v0 = vld [vmem:[%s518_s2] sm:$0xff] (!%p147_p2)  ;;  %v467_v1 = vmov (!%p147_p2), 0   ;;  %vm244_vm0 = vcmask (!%p147_p2), 261120  }
   0x6   : > { %150 = sbr.rel (%p147_p2) target bundleno = 244 (0xf4), region = 32  ;;  %280 = vmatprep.mubr.bf16.mxu0 (!%p147_p2), %v467_v1  ;;  %321 = vmatprep.mubr.bf16.mxu1 (!%p147_p2), %v467_v1 }
   0x7   : > { %446 = vset.pattern.permute.xlu0 (!%p147_p2), %v467_v1 }
   0x8   : > { %201 = vperm.xlu0 (!%p147_p2), %446, %v198_v0  }
   0xd   : > { %s521_s13 = smov (!%p174_p3, %s413_s13), 3 }
   0xe   : > { %s435_s16 = sshll.u32 %s521_s13, 6  ;;  %s418_s20 = sshll.u32 %s521_s13, 2 }
   0xf   : > { %s182_s19 = scalar_lea.vmem %s517_s1, %s435_s16  ;;  %s177_s23 = scalar_lea.vmem %s516_s0, %s418_s20 }
  0x10   : > { %v447_v2 = vld [vmem:[%s182_s19 + $0x4] ss:$16 sps:$4 sm:$0xff]   ;;  %v449_v3 = vld [vmem:[%s182_s19 + $0xc] ss:$16 sps:$4 sm:$0xff]   ;;  %v451_v4 = vld [vmem:[%s182_s19] ss:$16 sps:$4 sm:$0xff]  }
  0x11   : > { %248 = vmatprep.subr.bf16.mxu0 %v447_v2  ;;  %v452_v5 = vld [vmem:[%s182_s19 + $0x8] ss:$16 sps:$4 sm:$0xff]   ;;  %289 = vmatprep.subr.bf16.mxu1 %v449_v3  ;;  %v453_v6 = vld [vmem:[%s182_s19 + $0x24] ss:$16 sps:$4 sm:$0xff]   ;;  %v455_v7 = vld [vmem:[%s182_s19 + $0x2c] ss:$16 sps:$4 sm:$0xff]  }
  0x12   : > { %249 = vmatpush1.bf16.msra.mxu0 %v451_v4  ;;  %290 = vmatpush1.bf16.msra.mxu1 %v452_v5  ;;  %v457_v8 = vld [vmem:[%s182_s19 + $0x20] ss:$16 sps:$4 sm:$0xff]   ;;  %v458_v9 = vld [vmem:[%s182_s19 + $0x28] ss:$16 sps:$4 sm:$0xff]   ;;  %s436_s24 = sshll.u32 %s521_s13, 5 }
  0x13   : > { %250 = vmatprep.subr.bf16.mxu0 %v453_v6  ;;  %291 = vmatprep.subr.bf16.mxu1 %v455_v7  ;;  %v189_v10 = vld [vmem:[%s177_s23] sm:$0xf]  ;;  %s187_s27 = scalar_lea.vmem %s519_s3, %s436_s24 }
  0x16   : > { %251 = vmatpush1.bf16.msra.mxu0 %v457_v8  ;;  %292 = vmatpush1.bf16.msra.mxu1 %v458_v9 }
  0x19   : > { %431 = vmatmul.mubr.msk.bf16.vlgmr.msra.gmra.mrb[0].mxu0 %vm244_vm0, %v189_v10  ;;  %432 = vmatmul.mubr.msk.bf16.vlgmr.msra.gmra.mrb[0].mxu1 %vm244_vm0, %v189_v10 }
  0x87   : > { %v202_v11 = vpop.permute.xlu0 %201 }
  0xec   : > { %v282_v12 = vpop.f32.mrb[0].mxu0  ;;  %v323_v13 = vpop.f32.mrb[0].mxu1 }
  0xed   : > { %v283_v14 = vadd.f32 %v282_v12, %v202_v11  ;;  %v324_v15 = vadd.f32 %v323_v13, %v202_v11  ;;  %v284_v16 = vpop.f32.mrb[1].mxu0  ;;  %v325_v17 = vpop.f32.mrb[1].mxu1 }
  0xee   : > { %v285_v18 = vadd.f32 %v284_v16, %v202_v11  ;;  %v326_v19 = vadd.f32 %v325_v17, %v202_v11  ;;  %v286_v20 = vpop.f32.mrb[2].mxu0  ;;  %v327_v21 = vpop.f32.mrb[2].mxu1 }
  0xef   : > { %vm330_vm1 = vcmp.ge.f32.partialorder %v283_v14, 0.0  ;;  %v334_v22 = vmul.f32 0.2, %v283_v14  ;;  %vm332_vm2 = vcmp.ge.f32.partialorder %v324_v15, 0.0  ;;  %v336_v23 = vmul.f32 0.2, %v324_v15 }
  0xf0   : > { %vm331_vm3 = vcmp.ge.f32.partialorder %v285_v18, 0.0  ;;  %v335_v24 = vmul.f32 0.2, %v285_v18  ;;  %vm333_vm4 = vcmp.ge.f32.partialorder %v326_v19, 0.0  ;;  %v337_v25 = vmul.f32 0.2, %v326_v19 }
  0xf1   : > { %v338_v26 = vsel %vm330_vm1, %v283_v14, %v334_v22  ;;  %v340_v27 = vsel %vm332_vm2, %v324_v15, %v336_v23  ;;  %v287_v28 = vpop.f32.mrb[3].mxu0  ;;  %v328_v29 = vpop.f32.mrb[3].mxu1 }
  0xf2   : > { %342 = vst [vmem:[%s187_s27] sm:$0xff] %v338_v26  ;;  %344 = vst [vmem:[%s187_s27 + $0x10] sm:$0xff] %v340_v27  ;;  %v339_v30 = vsel %vm331_vm3, %v285_v18, %v335_v24  ;;  %v341_v31 = vsel %vm333_vm4, %v326_v19, %v337_v25 }
  0xf3   : > { %343 = vst [vmem:[%s187_s27 + $0x8] sm:$0xff] %v339_v30  ;;  %345 = vst [vmem:[%s187_s27 + $0x18] sm:$0xff] %v341_v31 }
  0xf4 PF: > { %s13_s12 = sadd.s32 1, %s465_s12  }
  0xf5   : > { %p10_p4 = scmp.ge.s32.totalorder %s13_s12, 6  }
  0xf7   :  { %12 = sbr.rel (!%p10_p4) target bundleno = 1 (0x1), region = 65 }

</bundles_post_ra>
